<compile_context>
chip_gen: v5e
topology: v5e:2x2
jax: 0.10.0
libtpu: 0.0.40
codegen_flags: <defaults>
</compile_context>

<pallas_src>
import functools

import numpy as np
import jax
import jax.numpy as jnp
from jax import lax
from jax.experimental import pallas as pl
from jax.experimental.pallas import tpu as pltpu


# ----------------------------------------------------------------------------
# sincos positional embedding (same math as get_2d_sincos_pos_embed)
# ----------------------------------------------------------------------------
def _get_1d_sincos(embed_dim, pos):
    omega = np.arange(embed_dim // 2, dtype=np.float64) / (embed_dim / 2.0)
    omega = 1.0 / (10000.0 ** omega)
    pos = pos.reshape(-1)
    out = np.einsum("m,d->md", pos, omega)
    return np.concatenate([np.sin(out), np.cos(out)], axis=1)


def get_2d_sincos_pos_embed(embed_dim, grid_size):
    gh, gw = grid_size
    grid_w = np.arange(gw, dtype=np.float64)
    grid_h = np.arange(gh, dtype=np.float64)
    mesh_w, mesh_h = np.meshgrid(grid_w, grid_h)   # flatten order = h*gw + w
    emb_h = _get_1d_sincos(embed_dim // 2, mesh_h)
    emb_w = _get_1d_sincos(embed_dim // 2, mesh_w)
    return np.concatenate([emb_h, emb_w], axis=1)  # (gh*gw, embed_dim)


# ----------------------------------------------------------------------------
# Fused transformer kernel
#   grid = (B, depth); batch parallel, depth sequential (h carried in VMEM scratch)
# ----------------------------------------------------------------------------
def _vit_transformer_kernel(
    x_ref, tw_ref, tb_ref, pos_ref,
    ln1g_ref, ln1b_ref, wqkv_ref, wo_ref, bo_ref,
    ln2g_ref, ln2b_ref, w1_ref, b1_ref, w2_ref, b2_ref,
    lnfg_ref, lnfb_ref, ctw_ref, ctb_ref,
    out_ref,
    h_ref,
    *, heads, dim_head,
):
    d = pl.program_id(1)
    last = pl.num_programs(1) - 1
    scale = dim_head ** -0.5

    def layer_norm(v, g, b):
        mu = jnp.mean(v, axis=-1, keepdims=True)
        vc = v - mu
        var = jnp.mean(vc * vc, axis=-1, keepdims=True)
        return vc * lax.rsqrt(var + 1e-5) * g + b

    # --- to_token + positional embedding (only on the first depth step) -----
    @pl.when(d == 0)
    def _():
        x = x_ref[0].astype(jnp.float32)                              # (N, L)
        h0 = jnp.dot(x, tw_ref[...], preferred_element_type=jnp.float32)
        h_ref[...] = h0 + tb_ref[...] + pos_ref[...]

    h = h_ref[...]                                                    # (N, D)

    # --- PreNorm multi-head attention + residual -----------------------------
    y = layer_norm(h, ln1g_ref[0], ln1b_ref[0])
    attn_out = jnp.zeros_like(h)
    for hh in range(heads):
        q = jnp.dot(y, wqkv_ref[0, 0 * heads + hh],
                    preferred_element_type=jnp.float32)               # (N, dh)
        k = jnp.dot(y, wqkv_ref[0, 1 * heads + hh],
                    preferred_element_type=jnp.float32)               # (N, dh)
        v = jnp.dot(y, wqkv_ref[0, 2 * heads + hh],
                    preferred_element_type=jnp.float32)               # (N, dh)
        # scores: contract last dims directly (no materialized k.T)
        s = lax.dot_general(q, k, (((1,), (1,)), ((), ())),
                            preferred_element_type=jnp.float32) * scale
        s = s - jnp.max(s, axis=-1, keepdims=True)
        pr = jnp.exp(s)
        pr = pr * pl.reciprocal(jnp.sum(pr, axis=-1, keepdims=True), approx=True)
        o_h = jnp.dot(pr, v, preferred_element_type=jnp.float32)      # (N, dh)
        # per-head output projection, summed over heads == concat(o_h) @ wo
        attn_out = attn_out + jnp.dot(o_h, wo_ref[0, hh],
                                      preferred_element_type=jnp.float32)
    h = h + attn_out + bo_ref[0]

    # --- PreNorm MLP (tanh) + residual ---------------------------------------
    y = layer_norm(h, ln2g_ref[0], ln2b_ref[0])
    y = jnp.tanh(jnp.dot(y, w1_ref[0], preferred_element_type=jnp.float32) + b1_ref[0])
    y = jnp.dot(y, w2_ref[0], preferred_element_type=jnp.float32) + b2_ref[0]
    h = h + y
    h_ref[...] = h

    # --- final LN + ConvTranspose2d(k=stride=patch)-as-linear + ReLU ---------
    @pl.when(d == last)
    def _():
        hf = layer_norm(h, lnfg_ref[...], lnfb_ref[...])
        ct = jnp.dot(hf, ctw_ref[...], preferred_element_type=jnp.float32) + ctb_ref[...]
        out_ref[0] = jnp.maximum(ct, 0.0).astype(out_ref.dtype)


def vit_transformer(x, params, cfg):
    """x: (B, N, latent) -> decoded patches (B, N, p*p*dim), ReLU applied."""
    B, N, L = x.shape
    D = cfg["dim"]
    heads, dh = cfg["heads"], cfg["dim_head"]
    depth = cfg["depth"]
    mlp = cfg["mlp_dim"]
    p = cfg["patch"]
    PPD = p * p * D

    # Per-head weight slabs (avoids in-kernel lane slicing / concatenation).
    # column of wqkv = j*inner + head*dh + d  ->  (depth, 3*heads, D, dh)
    wqkv = (params["wqkv"].reshape(depth, D, 3, heads, dh)
            .transpose(0, 2, 3, 1, 4).reshape(depth, 3 * heads, D, dh))
    # row of wo = head*dh + d  ->  (depth, heads, dh, D)
    wo = params["wo"].reshape(depth, heads, dh, D)
    ct_b_full = jnp.tile(params["ct_b"], p * p).reshape(1, PPD)

    def lspec(shape):           # per-layer weight: indexed by depth grid axis
        nd = len(shape)
        return pl.BlockSpec((1,) + tuple(shape[1:]),
                            lambda b, d, _nd=nd: (d,) + (0,) * (_nd - 1))

    def cspec(shape):           # constant weight: resident across the grid
        nd = len(shape)
        return pl.BlockSpec(tuple(shape), lambda b, d, _nd=nd: (0,) * _nd)

    in_specs = [
        pl.BlockSpec((1, N, L), lambda b, d: (b, 0, 0)),    # x
        cspec((L, D)),                                      # to_token_w
        cspec((1, D)),                                      # to_token_b
        cspec((N, D)),                                      # pos embedding
        lspec((depth, 1, D)), lspec((depth, 1, D)),         # ln1 gamma, beta
        lspec((depth, 3 * heads, D, dh)),                   # wqkv (per head)
        lspec((depth, heads, dh, D)),                       # wo   (per head)
        lspec((depth, 1, D)),                               # bo
        lspec((depth, 1, D)), lspec((depth, 1, D)),         # ln2 gamma, beta
        lspec((depth, D, mlp)), lspec((depth, 1, mlp)),     # w1, b1
        lspec((depth, mlp, D)), lspec((depth, 1, D)),       # w2, b2
        cspec((1, D)), cspec((1, D)),                       # final LN gamma, beta
        cspec((D, PPD)),                                    # ct_w
        cspec((1, PPD)),                                    # ct_b (tiled)
    ]
    out_spec = pl.BlockSpec((1, N, PPD), lambda b, d: (b, 0, 0))

    kernel = functools.partial(_vit_transformer_kernel, heads=heads, dim_head=dh)
    return pl.pallas_call(
        kernel,
        out_shape=jax.ShapeDtypeStruct((B, N, PPD), jnp.float32),
        grid=(B, depth),
        in_specs=in_specs,
        out_specs=out_spec,
        scratch_shapes=[pltpu.VMEM((N, D), jnp.float32)],   # carried activation h
        compiler_params=pltpu.CompilerParams(
            dimension_semantics=("parallel", "arbitrary")),
    )(
        x,
        params["to_token_w"], params["to_token_b"].reshape(1, D), params["pos"],
        params["ln1_g"].reshape(depth, 1, D), params["ln1_b"].reshape(depth, 1, D),
        wqkv, wo, params["bo"].reshape(depth, 1, D),
        params["ln2_g"].reshape(depth, 1, D), params["ln2_b"].reshape(depth, 1, D),
        params["w1"], params["b1"].reshape(depth, 1, mlp),
        params["w2"], params["b2"].reshape(depth, 1, D),
        params["lnf_g"].reshape(1, D), params["lnf_b"].reshape(1, D),
        params["ct_w"], ct_b_full,
    )


# ----------------------------------------------------------------------------
# Conv2d(dim, channels, 3x3, pad=1) as one lane-dense matmul per batch (im2col)
# ----------------------------------------------------------------------------
def _conv3x3_kernel(p_ref, w_ref, b_ref, o_ref):
    y = jnp.dot(p_ref[0], w_ref[...], preferred_element_type=jnp.float32) + b_ref[...]
    o_ref[0] = y.astype(o_ref.dtype)


def conv3x3_im2col(patches, w_mat, b_vec):
    """patches: (B, H*W, 9*Cin); w_mat: (9*Cin, Cpad); b_vec: (1, Cpad)."""
    B, HW, K = patches.shape
    Cp = w_mat.shape[1]
    return pl.pallas_call(
        _conv3x3_kernel,
        out_shape=jax.ShapeDtypeStruct((B, HW, Cp), jnp.float32),
        grid=(B,),
        in_specs=[
            pl.BlockSpec((1, HW, K), lambda b: (b, 0, 0)),
            pl.BlockSpec((K, Cp), lambda b: (0, 0)),
            pl.BlockSpec((1, Cp), lambda b: (0, 0)),
        ],
        out_specs=pl.BlockSpec((1, HW, Cp), lambda b: (b, 0, 0)),
        compiler_params=pltpu.CompilerParams(dimension_semantics=("parallel",)),
    )(patches, w_mat, b_vec)


# ----------------------------------------------------------------------------
# Parameters (deterministic synthetic init; shapes follow ViTDecoder.__init__)
# ----------------------------------------------------------------------------
def init_params(key, cfg):
    keys = iter(jax.random.split(key, 64))

    def nrm(shape, scale=0.02):
        return scale * jax.random.normal(next(keys), shape, jnp.float32)

    D, L, depth = cfg["dim"], cfg["latent_dim"], cfg["depth"]
    inner = cfg["heads"] * cfg["dim_head"]
    p, mlp, C = cfg["patch"], cfg["mlp_dim"], cfg["channels"]
    return {
        "to_token_w": nrm((L, D)), "to_token_b": nrm((D,)),
        "pos": jnp.asarray(get_2d_sincos_pos_embed(D, cfg["num_patches"]), jnp.float32),
        "ln1_g": 1.0 + nrm((depth, D)), "ln1_b": nrm((depth, D)),
        "wqkv": nrm((depth, D, 3 * inner)),                    # to_qkv (no bias)
        "wo": nrm((depth, inner, D)), "bo": nrm((depth, D)),   # to_out
        "ln2_g": 1.0 + nrm((depth, D)), "ln2_b": nrm((depth, D)),
        "w1": nrm((depth, D, mlp)), "b1": nrm((depth, mlp)),
        "w2": nrm((depth, mlp, D)), "b2": nrm((depth, D)),
        "lnf_g": 1.0 + nrm((D,)), "lnf_b": nrm((D,)),
        # ConvTranspose2d(dim, dim, k=patch, s=patch) as (D, p*p*D); cols = (ph, pw, oc)
        "ct_w": nrm((D, p * p * D)), "ct_b": nrm((D,)),
        # Conv2d(dim, channels, 3, padding=1) weight in HWIO layout
        "conv_w": nrm((3, 3, D, C)), "conv_b": nrm((C,)),
    }


# ----------------------------------------------------------------------------
# Pallas forward pass
# ----------------------------------------------------------------------------
def pallas_forward(x, params, cfg):
    B, N, L = x.shape
    D, p, C = cfg["dim"], cfg["patch"], cfg["channels"]
    Hp, Wp = cfg["num_patches"]
    H, W = Hp * p, Wp * p

    # Fused: embed -> transformer (depth layers) -> final LN -> conv-transpose + ReLU
    ct = vit_transformer(x, params, cfg)                       # (B, N, p*p*D)

    # Un-patch to NHWC image layout (tiny layout-only XLA ops).
    # TODO(synk): could be folded into the kernel writeback with an (Hp, Wp) token grid.
    img = (ct.reshape(B, Hp, Wp, p, p, D)
             .transpose(0, 1, 3, 2, 4, 5).reshape(B, H, W, D))

    # Conv2d(dim, channels, 3, padding=1): im2col + one matmul, Cout padded to 128 lanes.
    img_pad = jnp.pad(img, ((0, 0), (1, 1), (1, 1), (0, 0)))
    cols = jnp.concatenate(
        [img_pad[:, dy:dy + H, dx:dx + W, :] for dy in range(3) for dx in range(3)],
        axis=-1).reshape(B, H * W, 9 * D)
    Cp = 128
    w_mat = jnp.pad(params["conv_w"].reshape(9 * D, C), ((0, 0), (0, Cp - C)))
    b_vec = jnp.pad(params["conv_b"], (0, Cp - C)).reshape(1, Cp)
    out = conv3x3_im2col(cols, w_mat, b_vec)[:, :, :C]         # (B, H*W, C)
    return out.reshape(B, H, W, C).transpose(0, 3, 1, 2)       # NCHW, like PyTorch


# ----------------------------------------------------------------------------
# Pure-JAX reference (for correctness check)
# ----------------------------------------------------------------------------
def ref_forward(x, params, cfg):
    B, N, L = x.shape
    D, Hh, dh = cfg["dim"], cfg["heads"], cfg["dim_head"]
    scale = dh ** -0.5

    def ln(y, g, b):
        mu = y.mean(-1, keepdims=True)
        var = ((y - mu) ** 2).mean(-1, keepdims=True)
        return (y - mu) / jnp.sqrt(var + 1e-5) * g + b

    h = x @ params["to_token_w"] + params["to_token_b"] + params["pos"]
    for d in range(cfg["depth"]):
        y = ln(h, params["ln1_g"][d], params["ln1_b"][d])
        qkv = y @ params["wqkv"][d]
        q, k, v = jnp.split(qkv, 3, axis=-1)
        sh = lambda t: t.reshape(B, N, Hh, dh).transpose(0, 2, 1, 3)
        q, k, v = sh(q), sh(k), sh(v)
        s = jnp.einsum("bhnd,bhmd->bhnm", q, k) * scale
        a = jax.nn.softmax(s, axis=-1)
        o = jnp.einsum("bhnm,bhmd->bhnd", a, v).transpose(0, 2, 1, 3).reshape(B, N, -1)
        h = h + (o @ params["wo"][d] + params["bo"][d])
        y = ln(h, params["ln2_g"][d], params["ln2_b"][d])
        y = jnp.tanh(y @ params["w1"][d] + params["b1"][d]) @ params["w2"][d] + params["b2"][d]
        h = h + y
    h = ln(h, params["lnf_g"], params["lnf_b"])

    p = cfg["patch"]
    Hp, Wp = cfg["num_patches"]
    ct = h.reshape(B * N, D) @ params["ct_w"] + jnp.tile(params["ct_b"], p * p)
    img = (ct.reshape(B, Hp, Wp, p, p, D)
             .transpose(0, 1, 3, 2, 4, 5).reshape(B, Hp * p, Wp * p, D))
    img = jnp.maximum(img, 0.0)
    out = lax.conv_general_dilated(
        img, params["conv_w"], (1, 1), "SAME",
        dimension_numbers=("NHWC", "HWIO", "NHWC")) + params["conv_b"]
    return out.transpose(0, 3, 1, 2)


# ----------------------------------------------------------------------------
if __name__ == "__main__":
    cfg = dict(image=16, patch=4, dim=32, depth=2, heads=4, dim_head=8,
               mlp_dim=64, latent_dim=16, channels=3)
    cfg["num_patches"] = (cfg["image"] // cfg["patch"], cfg["image"] // cfg["patch"])

    key = jax.random.PRNGKey(0)
    pkey, xkey = jax.random.split(key)
    params = init_params(pkey, cfg)

    B = 2
    N = cfg["num_patches"][0] * cfg["num_patches"][1]
    x = jax.random.normal(xkey, (B, N, cfg["latent_dim"]), jnp.float32)

    fwd = jax.jit(lambda xx, pp: pallas_forward(xx, pp, cfg))
    ref_fn = jax.jit(lambda xx, pp: ref_forward(xx, pp, cfg))

    out = jax.block_until_ready(fwd(x, params))
    ref = jax.block_until_ready(ref_fn(x, params))

    assert out.shape == (B, cfg["channels"], cfg["image"], cfg["image"]), out.shape
    np.testing.assert_allclose(np.asarray(out), np.asarray(ref), atol=1e-2, rtol=2e-2)
    print("KERNEL_OK")
</pallas_src>

<mosaic_0001>
module attributes {stable_mosaic.version = 11 : i64} {
  func.func @_vit_transformer_kernel(%arg0: i32, %arg1: i32, %arg2: memref<1x16x16xf32, #tpu.memory_space<vmem>>, %arg3: memref<16x32xf32, #tpu.memory_space<vmem>>, %arg4: memref<1x32xf32, #tpu.memory_space<vmem>>, %arg5: memref<16x32xf32, #tpu.memory_space<vmem>>, %arg6: memref<1x1x32xf32, #tpu.memory_space<vmem>>, %arg7: memref<1x1x32xf32, #tpu.memory_space<vmem>>, %arg8: memref<1x12x32x8xf32, #tpu.memory_space<vmem>>, %arg9: memref<1x4x8x32xf32, #tpu.memory_space<vmem>>, %arg10: memref<1x1x32xf32, #tpu.memory_space<vmem>>, %arg11: memref<1x1x32xf32, #tpu.memory_space<vmem>>, %arg12: memref<1x1x32xf32, #tpu.memory_space<vmem>>, %arg13: memref<1x32x64xf32, #tpu.memory_space<vmem>>, %arg14: memref<1x1x64xf32, #tpu.memory_space<vmem>>, %arg15: memref<1x64x32xf32, #tpu.memory_space<vmem>>, %arg16: memref<1x1x32xf32, #tpu.memory_space<vmem>>, %arg17: memref<1x32xf32, #tpu.memory_space<vmem>>, %arg18: memref<1x32xf32, #tpu.memory_space<vmem>>, %arg19: memref<32x512xf32, #tpu.memory_space<vmem>>, %arg20: memref<1x512xf32, #tpu.memory_space<vmem>>, %arg21: memref<1x16x512xf32, #tpu.memory_space<vmem>>, %arg22: memref<16x32xf32, #tpu.memory_space<vmem>>) attributes {dimension_semantics = [#tpu.dimension_semantics<parallel>, #tpu.dimension_semantics<arbitrary>], iteration_bounds = array<i64: 2, 2>, scalar_prefetch = 0 : i64, scratch_operands = 1 : i64, tpu.core_type = #tpu.core_type<tc>, window_params = [{transform_indices = @transform_0, window_bounds = array<i64: 1, 16, 16>}, {pipeline_mode = #tpu.pipeline_mode<synchronous>, transform_indices = @transform_1, window_bounds = array<i64: 16, 32>}, {pipeline_mode = #tpu.pipeline_mode<synchronous>, transform_indices = @transform_2, window_bounds = array<i64: 1, 32>}, {pipeline_mode = #tpu.pipeline_mode<synchronous>, transform_indices = @transform_3, window_bounds = array<i64: 16, 32>}, {transform_indices = @transform_4, window_bounds = array<i64: 1, 1, 32>}, {transform_indices = @transform_5, window_bounds = array<i64: 1, 1, 32>}, {transform_indices = @transform_6, window_bounds = array<i64: 1, 12, 32, 8>}, {transform_indices = @transform_7, window_bounds = array<i64: 1, 4, 8, 32>}, {transform_indices = @transform_8, window_bounds = array<i64: 1, 1, 32>}, {transform_indices = @transform_9, window_bounds = array<i64: 1, 1, 32>}, {transform_indices = @transform_10, window_bounds = array<i64: 1, 1, 32>}, {transform_indices = @transform_11, window_bounds = array<i64: 1, 32, 64>}, {transform_indices = @transform_12, window_bounds = array<i64: 1, 1, 64>}, {transform_indices = @transform_13, window_bounds = array<i64: 1, 64, 32>}, {transform_indices = @transform_14, window_bounds = array<i64: 1, 1, 32>}, {pipeline_mode = #tpu.pipeline_mode<synchronous>, transform_indices = @transform_15, window_bounds = array<i64: 1, 32>}, {pipeline_mode = #tpu.pipeline_mode<synchronous>, transform_indices = @transform_16, window_bounds = array<i64: 1, 32>}, {pipeline_mode = #tpu.pipeline_mode<synchronous>, transform_indices = @transform_17, window_bounds = array<i64: 32, 512>}, {pipeline_mode = #tpu.pipeline_mode<synchronous>, transform_indices = @transform_18, window_bounds = array<i64: 1, 512>}, {transform_indices = @transform_19, window_bounds = array<i64: 1, 16, 512>}]} {
    %c0_i32 = arith.constant 0 : i32
    %0 = arith.cmpi eq, %arg1, %c0_i32 : i32
    %1 = arith.extui %0 : i1 to i32
    %c0_i32_0 = arith.constant 0 : i32
    %2 = arith.cmpi ne, %1, %c0_i32_0 : i32
    scf.if %2 {
      %c0_133 = arith.constant 0 : index
      %c0_134 = arith.constant 0 : index
      %c0_135 = arith.constant 0 : index
      %186 = vector.load %arg2[%c0_133, %c0_134, %c0_135] : memref<1x16x16xf32, #tpu.memory_space<vmem>>, vector<1x16x16xf32>
      %187 = vector.shape_cast %186 : vector<1x16x16xf32> to vector<16x16xf32>
      %c0_136 = arith.constant 0 : index
      %c0_137 = arith.constant 0 : index
      %188 = vector.load %arg3[%c0_136, %c0_137] : memref<16x32xf32, #tpu.memory_space<vmem>>, vector<16x32xf32>
      %cst_138 = arith.constant dense<0.000000e+00> : vector<16x32xf32>
      %189 = tpu.matmul %187, %188, %cst_138 {dimension_numbers = #tpu.dot_dimension_numbers<[1], [0], [0], [1], [0, 0, 1, 1], [], []>} : vector<16x16xf32>, vector<16x32xf32>, vector<16x32xf32> -> vector<16x32xf32>
      %c0_139 = arith.constant 0 : index
      %c0_140 = arith.constant 0 : index
      %190 = vector.load %arg4[%c0_139, %c0_140] : memref<1x32xf32, #tpu.memory_space<vmem>>, vector<1x32xf32>
      %191 = vector.broadcast %190 : vector<1x32xf32> to vector<16x32xf32>
      %192 = arith.addf %189, %191 : vector<16x32xf32>
      %c0_141 = arith.constant 0 : index
      %c0_142 = arith.constant 0 : index
      %193 = vector.load %arg5[%c0_141, %c0_142] : memref<16x32xf32, #tpu.memory_space<vmem>>, vector<16x32xf32>
      %194 = arith.addf %192, %193 : vector<16x32xf32>
      %c0_143 = arith.constant 0 : index
      %c0_144 = arith.constant 0 : index
      %195 = vector.load %arg22[%c0_143, %c0_144] : memref<16x32xf32, #tpu.memory_space<vmem>>, vector<16x32xf32>
      tpu.vector_store %arg22[%c0_143, %c0_144], %194 {strides = array<i32>} : memref<16x32xf32, #tpu.memory_space<vmem>>, vector<16x32xf32>,
    } else {
    }
    %c0 = arith.constant 0 : index
    %c0_1 = arith.constant 0 : index
    %3 = vector.load %arg22[%c0, %c0_1] : memref<16x32xf32, #tpu.memory_space<vmem>>, vector<16x32xf32>
    %c0_2 = arith.constant 0 : index
    %c0_3 = arith.constant 0 : index
    %c0_4 = arith.constant 0 : index
    %4 = vector.load %arg6[%c0_2, %c0_3, %c0_4] : memref<1x1x32xf32, #tpu.memory_space<vmem>>, vector<1x1x32xf32>
    %5 = vector.shape_cast %4 : vector<1x1x32xf32> to vector<1x32xf32>
    %c0_5 = arith.constant 0 : index
    %c0_6 = arith.constant 0 : index
    %c0_7 = arith.constant 0 : index
    %6 = vector.load %arg7[%c0_5, %c0_6, %c0_7] : memref<1x1x32xf32, #tpu.memory_space<vmem>>, vector<1x1x32xf32>
    %7 = vector.shape_cast %6 : vector<1x1x32xf32> to vector<1x32xf32>
    %cst = arith.constant dense<0.000000e+00> : vector<16xf32>
    %8 = vector.multi_reduction <add>, %3, %cst [1] : vector<16x32xf32> to vector<16xf32>
    %9 = vector.shape_cast %8 : vector<16xf32> to vector<16x1xf32>
    %cst_8 = arith.constant 3.200000e+01 : f32
    %10 = vector.broadcast %cst_8 : f32 to vector<16x1xf32>
    %11 = arith.divf %9, %10 : vector<16x1xf32>
    %12 = vector.broadcast %11 : vector<16x1xf32> to vector<16x32xf32>
    %13 = arith.subf %3, %12 : vector<16x32xf32>
    %14 = arith.mulf %13, %13 : vector<16x32xf32>
    %cst_9 = arith.constant dense<0.000000e+00> : vector<16xf32>
    %15 = vector.multi_reduction <add>, %14, %cst_9 [1] : vector<16x32xf32> to vector<16xf32>
    %16 = vector.shape_cast %15 : vector<16xf32> to vector<16x1xf32>
    %cst_10 = arith.constant 3.200000e+01 : f32
    %17 = vector.broadcast %cst_10 : f32 to vector<16x1xf32>
    %18 = arith.divf %16, %17 : vector<16x1xf32>
    %cst_11 = arith.constant 9.99999974E-6 : f32
    %19 = vector.broadcast %cst_11 : f32 to vector<16x1xf32>
    %20 = arith.addf %18, %19 : vector<16x1xf32>
    %21 = math.rsqrt %20 : vector<16x1xf32>
    %22 = vector.broadcast %21 : vector<16x1xf32> to vector<16x32xf32>
    %23 = arith.mulf %13, %22 : vector<16x32xf32>
    %24 = vector.broadcast %5 : vector<1x32xf32> to vector<16x32xf32>
    %25 = arith.mulf %23, %24 : vector<16x32xf32>
    %26 = vector.broadcast %7 : vector<1x32xf32> to vector<16x32xf32>
    %27 = arith.addf %25, %26 : vector<16x32xf32>
    %cst_12 = arith.constant 0.000000e+00 : f32
    %28 = vector.broadcast %cst_12 : f32 to vector<16x32xf32>
    %c0_13 = arith.constant 0 : index
    %c0_14 = arith.constant 0 : index
    %c0_15 = arith.constant 0 : index
    %c0_16 = arith.constant 0 : index
    %29 = vector.load %arg8[%c0_13, %c0_14, %c0_15, %c0_16] : memref<1x12x32x8xf32, #tpu.memory_space<vmem>>, vector<1x1x32x8xf32>
    %30 = vector.shape_cast %29 : vector<1x1x32x8xf32> to vector<32x8xf32>
    %cst_17 = arith.constant dense<0.000000e+00> : vector<16x8xf32>
    %31 = tpu.matmul %27, %30, %cst_17 {dimension_numbers = #tpu.dot_dimension_numbers<[1], [0], [0], [1], [0, 0, 1, 1], [], []>} : vector<16x32xf32>, vector<32x8xf32>, vector<16x8xf32> -> vector<16x8xf32>
    %c0_18 = arith.constant 0 : index
    %c4 = arith.constant 4 : index
    %c0_19 = arith.constant 0 : index
    %c0_20 = arith.constant 0 : index
    %32 = vector.load %arg8[%c0_18, %c4, %c0_19, %c0_20] : memref<1x12x32x8xf32, #tpu.memory_space<vmem>>, vector<1x1x32x8xf32>
    %33 = vector.shape_cast %32 : vector<1x1x32x8xf32> to vector<32x8xf32>
    %cst_21 = arith.constant dense<0.000000e+00> : vector<16x8xf32>
    %34 = tpu.matmul %27, %33, %cst_21 {dimension_numbers = #tpu.dot_dimension_numbers<[1], [0], [0], [1], [0, 0, 1, 1], [], []>} : vector<16x32xf32>, vector<32x8xf32>, vector<16x8xf32> -> vector<16x8xf32>
    %c0_22 = arith.constant 0 : index
    %c8 = arith.constant 8 : index
    %c0_23 = arith.constant 0 : index
    %c0_24 = arith.constant 0 : index
    %35 = vector.load %arg8[%c0_22, %c8, %c0_23, %c0_24] : memref<1x12x32x8xf32, #tpu.memory_space<vmem>>, vector<1x1x32x8xf32>
    %36 = vector.shape_cast %35 : vector<1x1x32x8xf32> to vector<32x8xf32>
    %cst_25 = arith.constant dense<0.000000e+00> : vector<16x8xf32>
    %37 = tpu.matmul %27, %36, %cst_25 {dimension_numbers = #tpu.dot_dimension_numbers<[1], [0], [0], [1], [0, 0, 1, 1], [], []>} : vector<16x32xf32>, vector<32x8xf32>, vector<16x8xf32> -> vector<16x8xf32>
    %cst_26 = arith.constant dense<0.000000e+00> : vector<16x16xf32>
    %38 = tpu.matmul %31, %34, %cst_26 {dimension_numbers = #tpu.dot_dimension_numbers<[1], [1], [0], [0], [0, 0, 1, 0], [], []>} : vector<16x8xf32>, vector<16x8xf32>, vector<16x16xf32> -> vector<16x16xf32>
    %cst_27 = arith.constant 0.353553385 : f32
    %39 = vector.broadcast %cst_27 : f32 to vector<16x16xf32>
    %40 = arith.mulf %38, %39 : vector<16x16xf32>
    %cst_28 = arith.constant dense<0xFF800000> : vector<16xf32>
    %41 = vector.multi_reduction <maximumf>, %40, %cst_28 [1] : vector<16x16xf32> to vector<16xf32>
    %42 = vector.shape_cast %41 : vector<16xf32> to vector<16x1xf32>
    %43 = vector.broadcast %42 : vector<16x1xf32> to vector<16x16xf32>
    %44 = arith.subf %40, %43 : vector<16x16xf32>
    %45 = math.exp %44 : vector<16x16xf32>
    %cst_29 = arith.constant dense<0.000000e+00> : vector<16xf32>
    %46 = vector.multi_reduction <add>, %45, %cst_29 [1] : vector<16x16xf32> to vector<16xf32>
    %47 = vector.shape_cast %46 : vector<16xf32> to vector<16x1xf32>
    %48 = tpu.reciprocal %47 {approx = true} : vector<16x1xf32> -> vector<16x1xf32>
    %49 = vector.broadcast %48 : vector<16x1xf32> to vector<16x16xf32>
    %50 = arith.mulf %45, %49 : vector<16x16xf32>
    %cst_30 = arith.constant dense<0.000000e+00> : vector<16x8xf32>
    %51 = tpu.matmul %50, %37, %cst_30 {dimension_numbers = #tpu.dot_dimension_numbers<[1], [0], [0], [1], [0, 0, 1, 1], [], []>} : vector<16x16xf32>, vector<16x8xf32>, vector<16x8xf32> -> vector<16x8xf32>
    %c0_31 = arith.constant 0 : index
    %c0_32 = arith.constant 0 : index
    %c0_33 = arith.constant 0 : index
    %c0_34 = arith.constant 0 : index
    %52 = vector.load %arg9[%c0_31, %c0_32, %c0_33, %c0_34] : memref<1x4x8x32xf32, #tpu.memory_space<vmem>>, vector<1x1x8x32xf32>
    %53 = vector.shape_cast %52 : vector<1x1x8x32xf32> to vector<8x32xf32>
    %cst_35 = arith.constant dense<0.000000e+00> : vector<16x32xf32>
    %54 = tpu.matmul %51, %53, %cst_35 {dimension_numbers = #tpu.dot_dimension_numbers<[1], [0], [0], [1], [0, 0, 1, 1], [], []>} : vector<16x8xf32>, vector<8x32xf32>, vector<16x32xf32> -> vector<16x32xf32>
    %55 = arith.addf %28, %54 : vector<16x32xf32>
    %c0_36 = arith.constant 0 : index
    %c1 = arith.constant 1 : index
    %c0_37 = arith.constant 0 : index
    %c0_38 = arith.constant 0 : index
    %56 = vector.load %arg8[%c0_36, %c1, %c0_37, %c0_38] : memref<1x12x32x8xf32, #tpu.memory_space<vmem>>, vector<1x1x32x8xf32>
    %57 = vector.shape_cast %56 : vector<1x1x32x8xf32> to vector<32x8xf32>
    %cst_39 = arith.constant dense<0.000000e+00> : vector<16x8xf32>
    %58 = tpu.matmul %27, %57, %cst_39 {dimension_numbers = #tpu.dot_dimension_numbers<[1], [0], [0], [1], [0, 0, 1, 1], [], []>} : vector<16x32xf32>, vector<32x8xf32>, vector<16x8xf32> -> vector<16x8xf32>
    %c0_40 = arith.constant 0 : index
    %c5 = arith.constant 5 : index
    %c0_41 = arith.constant 0 : index
    %c0_42 = arith.constant 0 : index
    %59 = vector.load %arg8[%c0_40, %c5, %c0_41, %c0_42] : memref<1x12x32x8xf32, #tpu.memory_space<vmem>>, vector<1x1x32x8xf32>
    %60 = vector.shape_cast %59 : vector<1x1x32x8xf32> to vector<32x8xf32>
    %cst_43 = arith.constant dense<0.000000e+00> : vector<16x8xf32>
    %61 = tpu.matmul %27, %60, %cst_43 {dimension_numbers = #tpu.dot_dimension_numbers<[1], [0], [0], [1], [0, 0, 1, 1], [], []>} : vector<16x32xf32>, vector<32x8xf32>, vector<16x8xf32> -> vector<16x8xf32>
    %c0_44 = arith.constant 0 : index
    %c9 = arith.constant 9 : index
    %c0_45 = arith.constant 0 : index
    %c0_46 = arith.constant 0 : index
    %62 = vector.load %arg8[%c0_44, %c9, %c0_45, %c0_46] : memref<1x12x32x8xf32, #tpu.memory_space<vmem>>, vector<1x1x32x8xf32>
    %63 = vector.shape_cast %62 : vector<1x1x32x8xf32> to vector<32x8xf32>
    %cst_47 = arith.constant dense<0.000000e+00> : vector<16x8xf32>
    %64 = tpu.matmul %27, %63, %cst_47 {dimension_numbers = #tpu.dot_dimension_numbers<[1], [0], [0], [1], [0, 0, 1, 1], [], []>} : vector<16x32xf32>, vector<32x8xf32>, vector<16x8xf32> -> vector<16x8xf32>
    %cst_48 = arith.constant dense<0.000000e+00> : vector<16x16xf32>
    %65 = tpu.matmul %58, %61, %cst_48 {dimension_numbers = #tpu.dot_dimension_numbers<[1], [1], [0], [0], [0, 0, 1, 0], [], []>} : vector<16x8xf32>, vector<16x8xf32>, vector<16x16xf32> -> vector<16x16xf32>
    %cst_49 = arith.constant 0.353553385 : f32
    %66 = vector.broadcast %cst_49 : f32 to vector<16x16xf32>
    %67 = arith.mulf %65, %66 : vector<16x16xf32>
    %cst_50 = arith.constant dense<0xFF800000> : vector<16xf32>
    %68 = vector.multi_reduction <maximumf>, %67, %cst_50 [1] : vector<16x16xf32> to vector<16xf32>
    %69 = vector.shape_cast %68 : vector<16xf32> to vector<16x1xf32>
    %70 = vector.broadcast %69 : vector<16x1xf32> to vector<16x16xf32>
    %71 = arith.subf %67, %70 : vector<16x16xf32>
    %72 = math.exp %71 : vector<16x16xf32>
    %cst_51 = arith.constant dense<0.000000e+00> : vector<16xf32>
    %73 = vector.multi_reduction <add>, %72, %cst_51 [1] : vector<16x16xf32> to vector<16xf32>
    %74 = vector.shape_cast %73 : vector<16xf32> to vector<16x1xf32>
    %75 = tpu.reciprocal %74 {approx = true} : vector<16x1xf32> -> vector<16x1xf32>
    %76 = vector.broadcast %75 : vector<16x1xf32> to vector<16x16xf32>
    %77 = arith.mulf %72, %76 : vector<16x16xf32>
    %cst_52 = arith.constant dense<0.000000e+00> : vector<16x8xf32>
    %78 = tpu.matmul %77, %64, %cst_52 {dimension_numbers = #tpu.dot_dimension_numbers<[1], [0], [0], [1], [0, 0, 1, 1], [], []>} : vector<16x16xf32>, vector<16x8xf32>, vector<16x8xf32> -> vector<16x8xf32>
    %c0_53 = arith.constant 0 : index
    %c1_54 = arith.constant 1 : index
    %c0_55 = arith.constant 0 : index
    %c0_56 = arith.constant 0 : index
    %79 = vector.load %arg9[%c0_53, %c1_54, %c0_55, %c0_56] : memref<1x4x8x32xf32, #tpu.memory_space<vmem>>, vector<1x1x8x32xf32>
    %80 = vector.shape_cast %79 : vector<1x1x8x32xf32> to vector<8x32xf32>
    %cst_57 = arith.constant dense<0.000000e+00> : vector<16x32xf32>
    %81 = tpu.matmul %78, %80, %cst_57 {dimension_numbers = #tpu.dot_dimension_numbers<[1], [0], [0], [1], [0, 0, 1, 1], [], []>} : vector<16x8xf32>, vector<8x32xf32>, vector<16x32xf32> -> vector<16x32xf32>
    %82 = arith.addf %55, %81 : vector<16x32xf32>
    %c0_58 = arith.constant 0 : index
    %c2 = arith.constant 2 : index
    %c0_59 = arith.constant 0 : index
    %c0_60 = arith.constant 0 : index
    %83 = vector.load %arg8[%c0_58, %c2, %c0_59, %c0_60] : memref<1x12x32x8xf32, #tpu.memory_space<vmem>>, vector<1x1x32x8xf32>
    %84 = vector.shape_cast %83 : vector<1x1x32x8xf32> to vector<32x8xf32>
    %cst_61 = arith.constant dense<0.000000e+00> : vector<16x8xf32>
    %85 = tpu.matmul %27, %84, %cst_61 {dimension_numbers = #tpu.dot_dimension_numbers<[1], [0], [0], [1], [0, 0, 1, 1], [], []>} : vector<16x32xf32>, vector<32x8xf32>, vector<16x8xf32> -> vector<16x8xf32>
    %c0_62 = arith.constant 0 : index
    %c6 = arith.constant 6 : index
    %c0_63 = arith.constant 0 : index
    %c0_64 = arith.constant 0 : index
    %86 = vector.load %arg8[%c0_62, %c6, %c0_63, %c0_64] : memref<1x12x32x8xf32, #tpu.memory_space<vmem>>, vector<1x1x32x8xf32>
    %87 = vector.shape_cast %86 : vector<1x1x32x8xf32> to vector<32x8xf32>
    %cst_65 = arith.constant dense<0.000000e+00> : vector<16x8xf32>
    %88 = tpu.matmul %27, %87, %cst_65 {dimension_numbers = #tpu.dot_dimension_numbers<[1], [0], [0], [1], [0, 0, 1, 1], [], []>} : vector<16x32xf32>, vector<32x8xf32>, vector<16x8xf32> -> vector<16x8xf32>
    %c0_66 = arith.constant 0 : index
    %c10 = arith.constant 10 : index
    %c0_67 = arith.constant 0 : index
    %c0_68 = arith.constant 0 : index
    %89 = vector.load %arg8[%c0_66, %c10, %c0_67, %c0_68] : memref<1x12x32x8xf32, #tpu.memory_space<vmem>>, vector<1x1x32x8xf32>
    %90 = vector.shape_cast %89 : vector<1x1x32x8xf32> to vector<32x8xf32>
    %cst_69 = arith.constant dense<0.000000e+00> : vector<16x8xf32>
    %91 = tpu.matmul %27, %90, %cst_69 {dimension_numbers = #tpu.dot_dimension_numbers<[1], [0], [0], [1], [0, 0, 1, 1], [], []>} : vector<16x32xf32>, vector<32x8xf32>, vector<16x8xf32> -> vector<16x8xf32>
    %cst_70 = arith.constant dense<0.000000e+00> : vector<16x16xf32>
    %92 = tpu.matmul %85, %88, %cst_70 {dimension_numbers = #tpu.dot_dimension_numbers<[1], [1], [0], [0], [0, 0, 1, 0], [], []>} : vector<16x8xf32>, vector<16x8xf32>, vector<16x16xf32> -> vector<16x16xf32>
    %cst_71 = arith.constant 0.353553385 : f32
    %93 = vector.broadcast %cst_71 : f32 to vector<16x16xf32>
    %94 = arith.mulf %92, %93 : vector<16x16xf32>
    %cst_72 = arith.constant dense<0xFF800000> : vector<16xf32>
    %95 = vector.multi_reduction <maximumf>, %94, %cst_72 [1] : vector<16x16xf32> to vector<16xf32>
    %96 = vector.shape_cast %95 : vector<16xf32> to vector<16x1xf32>
    %97 = vector.broadcast %96 : vector<16x1xf32> to vector<16x16xf32>
    %98 = arith.subf %94, %97 : vector<16x16xf32>
    %99 = math.exp %98 : vector<16x16xf32>
    %cst_73 = arith.constant dense<0.000000e+00> : vector<16xf32>
    %100 = vector.multi_reduction <add>, %99, %cst_73 [1] : vector<16x16xf32> to vector<16xf32>
    %101 = vector.shape_cast %100 : vector<16xf32> to vector<16x1xf32>
    %102 = tpu.reciprocal %101 {approx = true} : vector<16x1xf32> -> vector<16x1xf32>
    %103 = vector.broadcast %102 : vector<16x1xf32> to vector<16x16xf32>
    %104 = arith.mulf %99, %103 : vector<16x16xf32>
    %cst_74 = arith.constant dense<0.000000e+00> : vector<16x8xf32>
    %105 = tpu.matmul %104, %91, %cst_74 {dimension_numbers = #tpu.dot_dimension_numbers<[1], [0], [0], [1], [0, 0, 1, 1], [], []>} : vector<16x16xf32>, vector<16x8xf32>, vector<16x8xf32> -> vector<16x8xf32>
    %c0_75 = arith.constant 0 : index
    %c2_76 = arith.constant 2 : index
    %c0_77 = arith.constant 0 : index
    %c0_78 = arith.constant 0 : index
    %106 = vector.load %arg9[%c0_75, %c2_76, %c0_77, %c0_78] : memref<1x4x8x32xf32, #tpu.memory_space<vmem>>, vector<1x1x8x32xf32>
    %107 = vector.shape_cast %106 : vector<1x1x8x32xf32> to vector<8x32xf32>
    %cst_79 = arith.constant dense<0.000000e+00> : vector<16x32xf32>
    %108 = tpu.matmul %105, %107, %cst_79 {dimension_numbers = #tpu.dot_dimension_numbers<[1], [0], [0], [1], [0, 0, 1, 1], [], []>} : vector<16x8xf32>, vector<8x32xf32>, vector<16x32xf32> -> vector<16x32xf32>
    %109 = arith.addf %82, %108 : vector<16x32xf32>
    %c0_80 = arith.constant 0 : index
    %c3 = arith.constant 3 : index
    %c0_81 = arith.constant 0 : index
    %c0_82 = arith.constant 0 : index
    %110 = vector.load %arg8[%c0_80, %c3, %c0_81, %c0_82] : memref<1x12x32x8xf32, #tpu.memory_space<vmem>>, vector<1x1x32x8xf32>
    %111 = vector.shape_cast %110 : vector<1x1x32x8xf32> to vector<32x8xf32>
    %cst_83 = arith.constant dense<0.000000e+00> : vector<16x8xf32>
    %112 = tpu.matmul %27, %111, %cst_83 {dimension_numbers = #tpu.dot_dimension_numbers<[1], [0], [0], [1], [0, 0, 1, 1], [], []>} : vector<16x32xf32>, vector<32x8xf32>, vector<16x8xf32> -> vector<16x8xf32>
    %c0_84 = arith.constant 0 : index
    %c7 = arith.constant 7 : index
    %c0_85 = arith.constant 0 : index
    %c0_86 = arith.constant 0 : index
    %113 = vector.load %arg8[%c0_84, %c7, %c0_85, %c0_86] : memref<1x12x32x8xf32, #tpu.memory_space<vmem>>, vector<1x1x32x8xf32>
    %114 = vector.shape_cast %113 : vector<1x1x32x8xf32> to vector<32x8xf32>
    %cst_87 = arith.constant dense<0.000000e+00> : vector<16x8xf32>
    %115 = tpu.matmul %27, %114, %cst_87 {dimension_numbers = #tpu.dot_dimension_numbers<[1], [0], [0], [1], [0, 0, 1, 1], [], []>} : vector<16x32xf32>, vector<32x8xf32>, vector<16x8xf32> -> vector<16x8xf32>
    %c0_88 = arith.constant 0 : index
    %c11 = arith.constant 11 : index
    %c0_89 = arith.constant 0 : index
    %c0_90 = arith.constant 0 : index
    %116 = vector.load %arg8[%c0_88, %c11, %c0_89, %c0_90] : memref<1x12x32x8xf32, #tpu.memory_space<vmem>>, vector<1x1x32x8xf32>
    %117 = vector.shape_cast %116 : vector<1x1x32x8xf32> to vector<32x8xf32>
    %cst_91 = arith.constant dense<0.000000e+00> : vector<16x8xf32>
    %118 = tpu.matmul %27, %117, %cst_91 {dimension_numbers = #tpu.dot_dimension_numbers<[1], [0], [0], [1], [0, 0, 1, 1], [], []>} : vector<16x32xf32>, vector<32x8xf32>, vector<16x8xf32> -> vector<16x8xf32>
    %cst_92 = arith.constant dense<0.000000e+00> : vector<16x16xf32>
    %119 = tpu.matmul %112, %115, %cst_92 {dimension_numbers = #tpu.dot_dimension_numbers<[1], [1], [0], [0], [0, 0, 1, 0], [], []>} : vector<16x8xf32>, vector<16x8xf32>, vector<16x16xf32> -> vector<16x16xf32>
    %cst_93 = arith.constant 0.353553385 : f32
    %120 = vector.broadcast %cst_93 : f32 to vector<16x16xf32>
    %121 = arith.mulf %119, %120 : vector<16x16xf32>
    %cst_94 = arith.constant dense<0xFF800000> : vector<16xf32>
    %122 = vector.multi_reduction <maximumf>, %121, %cst_94 [1] : vector<16x16xf32> to vector<16xf32>
    %123 = vector.shape_cast %122 : vector<16xf32> to vector<16x1xf32>
    %124 = vector.broadcast %123 : vector<16x1xf32> to vector<16x16xf32>
    %125 = arith.subf %121, %124 : vector<16x16xf32>
    %126 = math.exp %125 : vector<16x16xf32>
    %cst_95 = arith.constant dense<0.000000e+00> : vector<16xf32>
    %127 = vector.multi_reduction <add>, %126, %cst_95 [1] : vector<16x16xf32> to vector<16xf32>
    %128 = vector.shape_cast %127 : vector<16xf32> to vector<16x1xf32>
    %129 = tpu.reciprocal %128 {approx = true} : vector<16x1xf32> -> vector<16x1xf32>
    %130 = vector.broadcast %129 : vector<16x1xf32> to vector<16x16xf32>
    %131 = arith.mulf %126, %130 : vector<16x16xf32>
    %cst_96 = arith.constant dense<0.000000e+00> : vector<16x8xf32>
    %132 = tpu.matmul %131, %118, %cst_96 {dimension_numbers = #tpu.dot_dimension_numbers<[1], [0], [0], [1], [0, 0, 1, 1], [], []>} : vector<16x16xf32>, vector<16x8xf32>, vector<16x8xf32> -> vector<16x8xf32>
    %c0_97 = arith.constant 0 : index
    %c3_98 = arith.constant 3 : index
    %c0_99 = arith.constant 0 : index
    %c0_100 = arith.constant 0 : index
    %133 = vector.load %arg9[%c0_97, %c3_98, %c0_99, %c0_100] : memref<1x4x8x32xf32, #tpu.memory_space<vmem>>, vector<1x1x8x32xf32>
    %134 = vector.shape_cast %133 : vector<1x1x8x32xf32> to vector<8x32xf32>
    %cst_101 = arith.constant dense<0.000000e+00> : vector<16x32xf32>
    %135 = tpu.matmul %132, %134, %cst_101 {dimension_numbers = #tpu.dot_dimension_numbers<[1], [0], [0], [1], [0, 0, 1, 1], [], []>} : vector<16x8xf32>, vector<8x32xf32>, vector<16x32xf32> -> vector<16x32xf32>
    %136 = arith.addf %109, %135 : vector<16x32xf32>
    %137 = arith.addf %3, %136 : vector<16x32xf32>
    %c0_102 = arith.constant 0 : index
    %c0_103 = arith.constant 0 : index
    %c0_104 = arith.constant 0 : index
    %138 = vector.load %arg10[%c0_102, %c0_103, %c0_104] : memref<1x1x32xf32, #tpu.memory_space<vmem>>, vector<1x1x32xf32>
    %139 = vector.shape_cast %138 : vector<1x1x32xf32> to vector<1x32xf32>
    %140 = vector.broadcast %139 : vector<1x32xf32> to vector<16x32xf32>
    %141 = arith.addf %137, %140 : vector<16x32xf32>
    %c0_105 = arith.constant 0 : index
    %c0_106 = arith.constant 0 : index
    %c0_107 = arith.constant 0 : index
    %142 = vector.load %arg11[%c0_105, %c0_106, %c0_107] : memref<1x1x32xf32, #tpu.memory_space<vmem>>, vector<1x1x32xf32>
    %143 = vector.shape_cast %142 : vector<1x1x32xf32> to vector<1x32xf32>
    %c0_108 = arith.constant 0 : index
    %c0_109 = arith.constant 0 : index
    %c0_110 = arith.constant 0 : index
    %144 = vector.load %arg12[%c0_108, %c0_109, %c0_110] : memref<1x1x32xf32, #tpu.memory_space<vmem>>, vector<1x1x32xf32>
    %145 = vector.shape_cast %144 : vector<1x1x32xf32> to vector<1x32xf32>
    %cst_111 = arith.constant dense<0.000000e+00> : vector<16xf32>
    %146 = vector.multi_reduction <add>, %141, %cst_111 [1] : vector<16x32xf32> to vector<16xf32>
    %147 = vector.shape_cast %146 : vector<16xf32> to vector<16x1xf32>
    %cst_112 = arith.constant 3.200000e+01 : f32
    %148 = vector.broadcast %cst_112 : f32 to vector<16x1xf32>
    %149 = arith.divf %147, %148 : vector<16x1xf32>
    %150 = vector.broadcast %149 : vector<16x1xf32> to vector<16x32xf32>
    %151 = arith.subf %141, %150 : vector<16x32xf32>
    %152 = arith.mulf %151, %151 : vector<16x32xf32>
    %cst_113 = arith.constant dense<0.000000e+00> : vector<16xf32>
    %153 = vector.multi_reduction <add>, %152, %cst_113 [1] : vector<16x32xf32> to vector<16xf32>
    %154 = vector.shape_cast %153 : vector<16xf32> to vector<16x1xf32>
    %cst_114 = arith.constant 3.200000e+01 : f32
    %155 = vector.broadcast %cst_114 : f32 to vector<16x1xf32>
    %156 = arith.divf %154, %155 : vector<16x1xf32>
    %cst_115 = arith.constant 9.99999974E-6 : f32
    %157 = vector.broadcast %cst_115 : f32 to vector<16x1xf32>
    %158 = arith.addf %156, %157 : vector<16x1xf32>
    %159 = math.rsqrt %158 : vector<16x1xf32>
    %160 = vector.broadcast %159 : vector<16x1xf32> to vector<16x32xf32>
    %161 = arith.mulf %151, %160 : vector<16x32xf32>
    %162 = vector.broadcast %143 : vector<1x32xf32> to vector<16x32xf32>
    %163 = arith.mulf %161, %162 : vector<16x32xf32>
    %164 = vector.broadcast %145 : vector<1x32xf32> to vector<16x32xf32>
    %165 = arith.addf %163, %164 : vector<16x32xf32>
    %c0_116 = arith.constant 0 : index
    %c0_117 = arith.constant 0 : index
    %c0_118 = arith.constant 0 : index
    %166 = vector.load %arg13[%c0_116, %c0_117, %c0_118] : memref<1x32x64xf32, #tpu.memory_space<vmem>>, vector<1x32x64xf32>
    %167 = vector.shape_cast %166 : vector<1x32x64xf32> to vector<32x64xf32>
    %cst_119 = arith.constant dense<0.000000e+00> : vector<16x64xf32>
    %168 = tpu.matmul %165, %167, %cst_119 {dimension_numbers = #tpu.dot_dimension_numbers<[1], [0], [0], [1], [0, 0, 1, 1], [], []>} : vector<16x32xf32>, vector<32x64xf32>, vector<16x64xf32> -> vector<16x64xf32>
    %c0_120 = arith.constant 0 : index
    %c0_121 = arith.constant 0 : index
    %c0_122 = arith.constant 0 : index
    %169 = vector.load %arg14[%c0_120, %c0_121, %c0_122] : memref<1x1x64xf32, #tpu.memory_space<vmem>>, vector<1x1x64xf32>
    %170 = vector.shape_cast %169 : vector<1x1x64xf32> to vector<1x64xf32>
    %171 = vector.broadcast %170 : vector<1x64xf32> to vector<16x64xf32>
    %172 = arith.addf %168, %171 : vector<16x64xf32>
    %173 = math.tanh %172 : vector<16x64xf32>
    %c0_123 = arith.constant 0 : index
    %c0_124 = arith.constant 0 : index
    %c0_125 = arith.constant 0 : index
    %174 = vector.load %arg15[%c0_123, %c0_124, %c0_125] : memref<1x64x32xf32, #tpu.memory_space<vmem>>, vector<1x64x32xf32>
    %175 = vector.shape_cast %174 : vector<1x64x32xf32> to vector<64x32xf32>
    %cst_126 = arith.constant dense<0.000000e+00> : vector<16x32xf32>
    %176 = tpu.matmul %173, %175, %cst_126 {dimension_numbers = #tpu.dot_dimension_numbers<[1], [0], [0], [1], [0, 0, 1, 1], [], []>} : vector<16x64xf32>, vector<64x32xf32>, vector<16x32xf32> -> vector<16x32xf32>
    %c0_127 = arith.constant 0 : index
    %c0_128 = arith.constant 0 : index
    %c0_129 = arith.constant 0 : index
    %177 = vector.load %arg16[%c0_127, %c0_128, %c0_129] : memref<1x1x32xf32, #tpu.memory_space<vmem>>, vector<1x1x32xf32>
    %178 = vector.shape_cast %177 : vector<1x1x32xf32> to vector<1x32xf32>
    %179 = vector.broadcast %178 : vector<1x32xf32> to vector<16x32xf32>
    %180 = arith.addf %176, %179 : vector<16x32xf32>
    %181 = arith.addf %141, %180 : vector<16x32xf32>
    %c0_130 = arith.constant 0 : index
    %c0_131 = arith.constant 0 : index
    %182 = vector.load %arg22[%c0_130, %c0_131] : memref<16x32xf32, #tpu.memory_space<vmem>>, vector<16x32xf32>
    tpu.vector_store %arg22[%c0_130, %c0_131], %181 {strides = array<i32>} : memref<16x32xf32, #tpu.memory_space<vmem>>, vector<16x32xf32>,
    %c1_i32 = arith.constant 1 : i32
    %183 = arith.cmpi eq, %arg1, %c1_i32 : i32
    %184 = arith.extui %183 : i1 to i32
    %c0_i32_132 = arith.constant 0 : i32
    %185 = arith.cmpi ne, %184, %c0_i32_132 : i32
    scf.if %185 {
      %c0_133 = arith.constant 0 : index
      %c0_134 = arith.constant 0 : index
      %186 = vector.load %arg17[%c0_133, %c0_134] : memref<1x32xf32, #tpu.memory_space<vmem>>, vector<1x32xf32>
      %c0_135 = arith.constant 0 : index
      %c0_136 = arith.constant 0 : index
      %187 = vector.load %arg18[%c0_135, %c0_136] : memref<1x32xf32, #tpu.memory_space<vmem>>, vector<1x32xf32>
      %cst_137 = arith.constant dense<0.000000e+00> : vector<16xf32>
      %188 = vector.multi_reduction <add>, %181, %cst_137 [1] : vector<16x32xf32> to vector<16xf32>
      %189 = vector.shape_cast %188 : vector<16xf32> to vector<16x1xf32>
      %cst_138 = arith.constant 3.200000e+01 : f32
      %190 = vector.broadcast %cst_138 : f32 to vector<16x1xf32>
      %191 = arith.divf %189, %190 : vector<16x1xf32>
      %192 = vector.broadcast %191 : vector<16x1xf32> to vector<16x32xf32>
      %193 = arith.subf %181, %192 : vector<16x32xf32>
      %194 = arith.mulf %193, %193 : vector<16x32xf32>
      %cst_139 = arith.constant dense<0.000000e+00> : vector<16xf32>
      %195 = vector.multi_reduction <add>, %194, %cst_139 [1] : vector<16x32xf32> to vector<16xf32>
      %196 = vector.shape_cast %195 : vector<16xf32> to vector<16x1xf32>
      %cst_140 = arith.constant 3.200000e+01 : f32
      %197 = vector.broadcast %cst_140 : f32 to vector<16x1xf32>
      %198 = arith.divf %196, %197 : vector<16x1xf32>
      %cst_141 = arith.constant 9.99999974E-6 : f32
      %199 = vector.broadcast %cst_141 : f32 to vector<16x1xf32>
      %200 = arith.addf %198, %199 : vector<16x1xf32>
      %201 = math.rsqrt %200 : vector<16x1xf32>
      %202 = vector.broadcast %201 : vector<16x1xf32> to vector<16x32xf32>
      %203 = arith.mulf %193, %202 : vector<16x32xf32>
      %204 = vector.broadcast %186 : vector<1x32xf32> to vector<16x32xf32>
      %205 = arith.mulf %203, %204 : vector<16x32xf32>
      %206 = vector.broadcast %187 : vector<1x32xf32> to vector<16x32xf32>
      %207 = arith.addf %205, %206 : vector<16x32xf32>
      %c0_142 = arith.constant 0 : index
      %c0_143 = arith.constant 0 : index
      %208 = vector.load %arg19[%c0_142, %c0_143] : memref<32x512xf32, #tpu.memory_space<vmem>>, vector<32x512xf32>
      %cst_144 = arith.constant dense<0.000000e+00> : vector<16x512xf32>
      %209 = tpu.matmul %207, %208, %cst_144 {dimension_numbers = #tpu.dot_dimension_numbers<[1], [0], [0], [1], [0, 0, 1, 1], [], []>} : vector<16x32xf32>, vector<32x512xf32>, vector<16x512xf32> -> vector<16x512xf32>
      %c0_145 = arith.constant 0 : index
      %c0_146 = arith.constant 0 : index
      %210 = vector.load %arg20[%c0_145, %c0_146] : memref<1x512xf32, #tpu.memory_space<vmem>>, vector<1x512xf32>
      %211 = vector.broadcast %210 : vector<1x512xf32> to vector<16x512xf32>
      %212 = arith.addf %209, %211 : vector<16x512xf32>
      %cst_147 = arith.constant 0.000000e+00 : f32
      %213 = vector.broadcast %cst_147 : f32 to vector<16x512xf32>
      %214 = arith.maximumf %212, %213 : vector<16x512xf32>
      %c0_148 = arith.constant 0 : index
      %c0_149 = arith.constant 0 : index
      %c0_150 = arith.constant 0 : index
      %215 = vector.load %arg21[%c0_148, %c0_149, %c0_150] : memref<1x16x512xf32, #tpu.memory_space<vmem>>, vector<1x16x512xf32>
      %216 = vector.shape_cast %215 : vector<1x16x512xf32> to vector<16x512xf32>
      %217 = vector.shape_cast %214 : vector<16x512xf32> to vector<1x16x512xf32>
      tpu.vector_store %arg21[%c0_148, %c0_149, %c0_150], %217 {strides = array<i32>} : memref<1x16x512xf32, #tpu.memory_space<vmem>>, vector<1x16x512xf32>,
    } else {
    }
    return
  }
  func.func @transform_0(%arg0: i32, %arg1: i32) -> (i32, i32, i32) {
    %c0_i32 = arith.constant 0 : i32
    %c0_i32_0 = arith.constant 0 : i32
    %c0_i32_1 = arith.constant 0 : i32
    return %arg0, %c0_i32, %c0_i32_0 : i32, i32, i32
  }
  func.func @transform_1(%arg0: i32, %arg1: i32) -> (i32, i32) {
    %c0_i32 = arith.constant 0 : i32
    %c0_i32_0 = arith.constant 0 : i32
    %c0_i32_1 = arith.constant 0 : i32
    return %c0_i32, %c0_i32_0 : i32, i32
  }
  func.func @transform_2(%arg0: i32, %arg1: i32) -> (i32, i32) {
    %c0_i32 = arith.constant 0 : i32
    %c0_i32_0 = arith.constant 0 : i32
    %c0_i32_1 = arith.constant 0 : i32
    return %c0_i32, %c0_i32_0 : i32, i32
  }
  func.func @transform_3(%arg0: i32, %arg1: i32) -> (i32, i32) {
    %c0_i32 = arith.constant 0 : i32
    %c0_i32_0 = arith.constant 0 : i32
    %c0_i32_1 = arith.constant 0 : i32
    return %c0_i32, %c0_i32_0 : i32, i32
  }
  func.func @transform_4(%arg0: i32, %arg1: i32) -> (i32, i32, i32) {
    %c0_i32 = arith.constant 0 : i32
    %c0_i32_0 = arith.constant 0 : i32
    %c0_i32_1 = arith.constant 0 : i32
    return %arg1, %c0_i32, %c0_i32_0 : i32, i32, i32
  }
  func.func @transform_5(%arg0: i32, %arg1: i32) -> (i32, i32, i32) {
    %c0_i32 = arith.constant 0 : i32
    %c0_i32_0 = arith.constant 0 : i32
    %c0_i32_1 = arith.constant 0 : i32
    return %arg1, %c0_i32, %c0_i32_0 : i32, i32, i32
  }
  func.func @transform_6(%arg0: i32, %arg1: i32) -> (i32, i32, i32, i32) {
    %c0_i32 = arith.constant 0 : i32
    %c0_i32_0 = arith.constant 0 : i32
    %c0_i32_1 = arith.constant 0 : i32
    %c0_i32_2 = arith.constant 0 : i32
    return %arg1, %c0_i32, %c0_i32_0, %c0_i32_1 : i32, i32, i32, i32
  }
  func.func @transform_7(%arg0: i32, %arg1: i32) -> (i32, i32, i32, i32) {
    %c0_i32 = arith.constant 0 : i32
    %c0_i32_0 = arith.constant 0 : i32
    %c0_i32_1 = arith.constant 0 : i32
    %c0_i32_2 = arith.constant 0 : i32
    return %arg1, %c0_i32, %c0_i32_0, %c0_i32_1 : i32, i32, i32, i32
  }
  func.func @transform_8(%arg0: i32, %arg1: i32) -> (i32, i32, i32) {
    %c0_i32 = arith.constant 0 : i32
    %c0_i32_0 = arith.constant 0 : i32
    %c0_i32_1 = arith.constant 0 : i32
    return %arg1, %c0_i32, %c0_i32_0 : i32, i32, i32
  }
  func.func @transform_9(%arg0: i32, %arg1: i32) -> (i32, i32, i32) {
    %c0_i32 = arith.constant 0 : i32
    %c0_i32_0 = arith.constant 0 : i32
    %c0_i32_1 = arith.constant 0 : i32
    return %arg1, %c0_i32, %c0_i32_0 : i32, i32, i32
  }
  func.func @transform_10(%arg0: i32, %arg1: i32) -> (i32, i32, i32) {
    %c0_i32 = arith.constant 0 : i32
    %c0_i32_0 = arith.constant 0 : i32
    %c0_i32_1 = arith.constant 0 : i32
    return %arg1, %c0_i32, %c0_i32_0 : i32, i32, i32
  }
  func.func @transform_11(%arg0: i32, %arg1: i32) -> (i32, i32, i32) {
    %c0_i32 = arith.constant 0 : i32
    %c0_i32_0 = arith.constant 0 : i32
    %c0_i32_1 = arith.constant 0 : i32
    return %arg1, %c0_i32, %c0_i32_0 : i32, i32, i32
  }
  func.func @transform_12(%arg0: i32, %arg1: i32) -> (i32, i32, i32) {
    %c0_i32 = arith.constant 0 : i32
    %c0_i32_0 = arith.constant 0 : i32
    %c0_i32_1 = arith.constant 0 : i32
    return %arg1, %c0_i32, %c0_i32_0 : i32, i32, i32
  }
  func.func @transform_13(%arg0: i32, %arg1: i32) -> (i32, i32, i32) {
    %c0_i32 = arith.constant 0 : i32
    %c0_i32_0 = arith.constant 0 : i32
    %c0_i32_1 = arith.constant 0 : i32
    return %arg1, %c0_i32, %c0_i32_0 : i32, i32, i32
  }
  func.func @transform_14(%arg0: i32, %arg1: i32) -> (i32, i32, i32) {
    %c0_i32 = arith.constant 0 : i32
    %c0_i32_0 = arith.constant 0 : i32
    %c0_i32_1 = arith.constant 0 : i32
    return %arg1, %c0_i32, %c0_i32_0 : i32, i32, i32
  }
  func.func @transform_15(%arg0: i32, %arg1: i32) -> (i32, i32) {
    %c0_i32 = arith.constant 0 : i32
    %c0_i32_0 = arith.constant 0 : i32
    %c0_i32_1 = arith.constant 0 : i32
    return %c0_i32, %c0_i32_0 : i32, i32
  }
  func.func @transform_16(%arg0: i32, %arg1: i32) -> (i32, i32) {
    %c0_i32 = arith.constant 0 : i32
    %c0_i32_0 = arith.constant 0 : i32
    %c0_i32_1 = arith.constant 0 : i32
    return %c0_i32, %c0_i32_0 : i32, i32
  }
  func.func @transform_17(%arg0: i32, %arg1: i32) -> (i32, i32) {
    %c0_i32 = arith.constant 0 : i32
    %c0_i32_0 = arith.constant 0 : i32
    %c0_i32_1 = arith.constant 0 : i32
    return %c0_i32, %c0_i32_0 : i32, i32
  }
  func.func @transform_18(%arg0: i32, %arg1: i32) -> (i32, i32) {
    %c0_i32 = arith.constant 0 : i32
    %c0_i32_0 = arith.constant 0 : i32
    %c0_i32_1 = arith.constant 0 : i32
    return %c0_i32, %c0_i32_0 : i32, i32
  }
  func.func @transform_19(%arg0: i32, %arg1: i32) -> (i32, i32, i32) {
    %c0_i32 = arith.constant 0 : i32
    %c0_i32_0 = arith.constant 0 : i32
    %c0_i32_1 = arith.constant 0 : i32
    return %arg0, %c0_i32, %c0_i32_0 : i32, i32, i32
  }
}

module attributes {stable_mosaic.version = 11 : i64} {
  func.func @_conv3x3_kernel(%arg0: i32, %arg1: memref<1x256x288xf32, #tpu.memory_space<vmem>>, %arg2: memref<288x128xf32, #tpu.memory_space<vmem>>, %arg3: memref<1x128xf32, #tpu.memory_space<vmem>>, %arg4: memref<1x256x128xf32, #tpu.memory_space<vmem>>) attributes {dimension_semantics = [#tpu.dimension_semantics<parallel>], iteration_bounds = array<i64: 2>, scalar_prefetch = 0 : i64, scratch_operands = 0 : i64, tpu.core_type = #tpu.core_type<tc>, window_params = [{transform_indices = @transform_0, window_bounds = array<i64: 1, 256, 288>}, {pipeline_mode = #tpu.pipeline_mode<synchronous>, transform_indices = @transform_1, window_bounds = array<i64: 288, 128>}, {pipeline_mode = #tpu.pipeline_mode<synchronous>, transform_indices = @transform_2, window_bounds = array<i64: 1, 128>}, {transform_indices = @transform_3, window_bounds = array<i64: 1, 256, 128>}]} {
    %c0 = arith.constant 0 : index
    %c0_0 = arith.constant 0 : index
    %c0_1 = arith.constant 0 : index
    %0 = vector.load %arg1[%c0, %c0_0, %c0_1] : memref<1x256x288xf32, #tpu.memory_space<vmem>>, vector<1x256x288xf32>
    %1 = vector.shape_cast %0 : vector<1x256x288xf32> to vector<256x288xf32>
    %c0_2 = arith.constant 0 : index
    %c0_3 = arith.constant 0 : index
    %2 = vector.load %arg2[%c0_2, %c0_3] : memref<288x128xf32, #tpu.memory_space<vmem>>, vector<288x128xf32>
    %cst = arith.constant dense<0.000000e+00> : vector<256x128xf32>
    %3 = tpu.matmul %1, %2, %cst {dimension_numbers = #tpu.dot_dimension_numbers<[1], [0], [0], [1], [0, 0, 1, 1], [], []>} : vector<256x288xf32>, vector<288x128xf32>, vector<256x128xf32> -> vector<256x128xf32>
    %c0_4 = arith.constant 0 : index
    %c0_5 = arith.constant 0 : index
    %4 = vector.load %arg3[%c0_4, %c0_5] : memref<1x128xf32, #tpu.memory_space<vmem>>, vector<1x128xf32>
    %5 = vector.broadcast %4 : vector<1x128xf32> to vector<256x128xf32>
    %6 = arith.addf %3, %5 : vector<256x128xf32>
    %c0_6 = arith.constant 0 : index
    %c0_7 = arith.constant 0 : index
    %c0_8 = arith.constant 0 : index
    %7 = vector.load %arg4[%c0_6, %c0_7, %c0_8] : memref<1x256x128xf32, #tpu.memory_space<vmem>>, vector<1x256x128xf32>
    %8 = vector.shape_cast %7 : vector<1x256x128xf32> to vector<256x128xf32>
    %9 = vector.shape_cast %6 : vector<256x128xf32> to vector<1x256x128xf32>
    tpu.vector_store %arg4[%c0_6, %c0_7, %c0_8], %9 {strides = array<i32>} : memref<1x256x128xf32, #tpu.memory_space<vmem>>, vector<1x256x128xf32>,
    return
  }
  func.func @transform_0(%arg0: i32) -> (i32, i32, i32) {
    %c0_i32 = arith.constant 0 : i32
    %c0_i32_0 = arith.constant 0 : i32
    %c0_i32_1 = arith.constant 0 : i32
    return %arg0, %c0_i32, %c0_i32_0 : i32, i32, i32
  }
  func.func @transform_1(%arg0: i32) -> (i32, i32) {
    %c0_i32 = arith.constant 0 : i32
    %c0_i32_0 = arith.constant 0 : i32
    %c0_i32_1 = arith.constant 0 : i32
    return %c0_i32, %c0_i32_0 : i32, i32
  }
  func.func @transform_2(%arg0: i32) -> (i32, i32) {
    %c0_i32 = arith.constant 0 : i32
    %c0_i32_0 = arith.constant 0 : i32
    %c0_i32_1 = arith.constant 0 : i32
    return %c0_i32, %c0_i32_0 : i32, i32
  }
  func.func @transform_3(%arg0: i32) -> (i32, i32, i32) {
    %c0_i32 = arith.constant 0 : i32
    %c0_i32_0 = arith.constant 0 : i32
    %c0_i32_1 = arith.constant 0 : i32
    return %arg0, %c0_i32, %c0_i32_0 : i32, i32, i32
  }
}

</mosaic_0001>

<bundles_post_ra>
// kernel: tile.8
= control target key start
LH: loop header
LB: loop body
LE: loop exit
PB: predicated region body
PF: predicated region fallthrough
CT: control target
= control target key end

     0   :  { %s28_s0 = inlined_call_operand.vmem [shape: f32[32], index: 0, kind: input, shape index: {}]   ;;  %s29_s1 = inlined_call_operand.vmem [shape: f32[16,32], index: 1, kind: output, shape index: {}]  }
   0x1   :  { %v4_v0 = vld [vmem:[%s28_s0] ss:$0 sm:$0xff] }
   0x2   :  { %5 = vst [vmem:[%s29_s1] sm:$0xff] %v4_v0 }
   0x3   :  { %8 = vst [vmem:[%s29_s1 + $0x8] sm:$0xff] %v4_v0 }

// kernel: tile.9
= control target key start
LH: loop header
LB: loop body
LE: loop exit
PB: predicated region body
PF: predicated region fallthrough
CT: control target
= control target key end

     0   :  { %s56_s8 = smov 96   ;;  %s57_s11 = smov 32   ;;  %vm3_vm0 = vcmask 261120   ;;  %vm9_vm1 = vcmask 1048320   ;;  %vm15_vm2 = vcmask 785920   ;;  %vm21_vm3 = vcmask 523520   ;;  %s93_s0 = inlined_call_operand.vmem [shape: f32[16,32], index: 0, kind: input, shape index: {}]   ;;  %s94_s1 = inlined_call_operand.vmem [shape: f32[1,512], index: 1, kind: output, shape index: {}]  }
   0x1   :  { %v47_v0 = vld [vmem:[%s93_s0 + $0x3] ss:$4 sm:$0xf]   ;;  %v49_v1 = vld [vmem:[%s93_s0 + $0x1] ss:$4 sm:$0xf]  }
   0x2   :  { %7 = vrot.lane.b32.xlu0 %v47_v0, %s56_s8  ;;  %19 = vrot.lane.b32.xlu1 %v49_v1, %s57_s11  ;;  %v48_v2 = vld [vmem:[%s93_s0 + $0x2] ss:$4 sm:$0xf]   ;;  %s58_s14 = smov 64  }
   0x3   :  { %v2_v3 = vld [vmem:[%s93_s0] ss:$4 sm:$0xf]  }
   0x4   :  { %4 = vst.msk [vmem:[#allocation0] ss:$8 sm:$0xf] %vm3_vm0, %v2_v3  }
   0xa   :  { %13 = vrot.lane.b32.xlu0 %v48_v2, %s58_s14 }
  0x74   :  { %v8_v4 = vpop.permute.xlu0 %7   ;;  %v20_v5 = vpop.permute.xlu1 %19  }
  0x75   :  { %10 = vst.msk [vmem:[#allocation0] ss:$8 sm:$0xf] %vm9_vm1, %v8_v4  }
  0x7c   :  { %v14_v6 = vpop.permute.xlu0 %13  }
  0x7d   :  { %16 = vst.msk [vmem:[#allocation0] ss:$8 sm:$0xf] %vm15_vm2, %v14_v6  }
  0x7e   :  { %22 = vst.msk [vmem:[#allocation0] ss:$8 sm:$0xf] %vm21_vm3, %v20_v5  }
  0x85   :  { %v25_v7 = vld [vmem:[#allocation0] sm:$0x1]  ;;  %v30_v8 = vld [vmem:[#allocation0 + $0x8] sm:$0x1]  ;;  %v36_v9 = vld [vmem:[#allocation0 + $0x10] sm:$0x1] }
  0x86   :  { %28 = vst [vmem:[%s94_s1] sm:$0x1] %v25_v7  ;;  %v42_v10 = vld [vmem:[#allocation0 + $0x18] sm:$0x1] }
  0x87   :  { %50 = vst [vmem:[%s94_s1 + $0x1] sm:$0x1] %v30_v8 }
  0x88   :  { %51 = vst [vmem:[%s94_s1 + $0x2] sm:$0x1] %v36_v9 }
  0x89   :  { %52 = vst [vmem:[%s94_s1 + $0x3] sm:$0x1] %v42_v10 }

// kernel: _lambda_.3
= control target key start
LH: loop header
LB: loop body
LE: loop exit
PB: predicated region body
PF: predicated region fallthrough
CT: control target
= control target key end

     0   :  { %s947_s12 = smov 0   ;;  %s1378_s0 = inlined_call_operand.vmem [shape: f32[2,256,288], index: 0, kind: input, shape index: {}]   ;;  %s1379_s1 = inlined_call_operand.vmem [shape: f32[288,128], index: 1, kind: input, shape index: {}]   ;;  %s1380_s2 = inlined_call_operand.vmem [shape: f32[1,128], index: 2, kind: input, shape index: {}]   ;;  %s1381_s3 = inlined_call_operand.vmem [shape: f32[2,256,128], index: 3, kind: output, shape index: {}]  }
   0x1 LB: > { %s830_s13 = sadd.s32 4294967295, %s925_s12   ;;  %p834_p0 = scmp.ge.s32.totalorder %s925_s12, 1  ;;  %s925_s12 = sphi %s947_s12, %s13_s12  }
   0x2   : > { %p137_p1 = scmp.lt.s32.totalorder %s925_s12, 3 }
   0x4   : > { %p138_p2 = pnand %p834_p0, %p137_p1 }
   0x5   : > { %p161_p3 = scmp.lt.s32.totalorder (!%p138_p2), %s830_s13, 1 }
   0x6   : > { %141 = sbr.rel (%p138_p2) target bundleno = 364 (0x16c), region = 32 }
   0xb   : > { %v282_v0 = vld [vmem:[%s1379_s1 + $0x78] sm:$0xff]  ;;  %v281_v2 = vld [vmem:[%s1379_s1 + $0x70] sm:$0xff]  ;;  %v280_v5 = vld [vmem:[%s1379_s1 + $0x68] sm:$0xff]  ;;  %s1383_s13 = smov (!%p161_p3, %s830_s13), 1  ;;  %vm307_vm0 = vcmask 261120  }
   0xc   : > { %v961_v1 = vld [vmem:[%s1379_s1 + $0x118] sm:$0xff]  ;;  %404 = vmatpush.msra.mxu0 %v282_v0  ;;  %873 = vmatpush.msra.mxu3 %v282_v0  ;;  %v974_v4 = vld [vmem:[%s1379_s1 + $0x110] sm:$0xff]  ;;  %v991_v7 = vld [vmem:[%s1379_s1 + $0x108] sm:$0xff]  ;;  %s909_s7 = smul.u32 768, %s1383_s13  ;;  %s872_s19 = sshll.u32 %s1383_s13, 8 }
   0xd   : > { %v969_v3 = vld [vmem:[%s1379_s1 + $0xf8] sm:$0xff]  ;;  %642 = vmatpush.msra.mxu2 %v961_v1  ;;  %v984_v6 = vld [vmem:[%s1379_s1 + $0xf0] sm:$0xff]  ;;  %v996_v8 = vld [vmem:[%s1379_s1 + $0xe8] sm:$0xff]  ;;  %s1241_s22 = scalar_lea.vmem %s1381_s3, %s872_s19 }
   0xe   : > { %517 = vmatpush.msra.mxu1 %v969_v3  ;;  %405 = vmatpush.msra.mxu0 %v281_v2  ;;  %v279_v9 = vld [vmem:[%s1379_s1 + $0x60] sm:$0xff]  ;;  %s1019_s16 = scalar_lea.vmem %s1378_s0, %s909_s7  ;;  %v278_v12 = vld [vmem:[%s1379_s1 + $0x58] sm:$0xff]  ;;  %v277_v15 = vld [vmem:[%s1379_s1 + $0x50] sm:$0xff] }
   0xf   : > { %874 = vmatpush.msra.mxu3 %v281_v2  ;;  %643 = vmatpush.msra.mxu2 %v974_v4  ;;  %v1007_v10 = vld [vmem:[%s1379_s1 + $0x100] sm:$0xff]  ;;  %v173_v13 = vld [vmem:[%s1019_s16 + $0x10] sm:$0xff]  ;;  %v1028_v14 = vld [vmem:[%s1379_s1 + $0xd8] sm:$0xff] }
  0x10   : > { %518 = vmatpush.msra.mxu1 %v984_v6  ;;  %406 = vmatpush.msra.mxu0 %v280_v5  ;;  %v1012_v11 = vld [vmem:[%s1379_s1 + $0xe0] sm:$0xff]  ;;  %v1039_v16 = vld [vmem:[%s1379_s1 + $0xd0] sm:$0xff]  ;;  %v276_v17 = vld [vmem:[%s1379_s1 + $0x48] sm:$0xff] }
  0x11   : > { %875 = vmatpush.msra.mxu3 %v280_v5  ;;  %644 = vmatpush.msra.mxu2 %v991_v7  ;;  %v1048_v18 = vld [vmem:[%s1379_s1 + $0xc8] sm:$0xff]  ;;  %v275_v19 = vld [vmem:[%s1379_s1 + $0x40] sm:$0xff]  ;;  %v274_v22 = vld [vmem:[%s1379_s1 + $0x38] sm:$0xff] }
  0x12   : > { %519 = vmatpush.msra.mxu1 %v996_v8  ;;  %407 = vmatpush.msra.mxu0 %v279_v9  ;;  %v1057_v20 = vld [vmem:[%s1379_s1 + $0xc0] sm:$0xff]  ;;  %v176_v21 = vld [vmem:[%s1019_s16 + $0x28] sm:$0xff]  ;;  %v1067_v23 = vld [vmem:[%s1379_s1 + $0xb8] sm:$0xff] }
  0x13   : > { %876 = vmatpush.msra.mxu3 %v279_v9  ;;  %645 = vmatpush.msra.mxu2 %v1007_v10  ;;  %v273_v24 = vld [vmem:[%s1379_s1 + $0x30] sm:$0xff]  ;;  %v272_v26 = vld [vmem:[%s1379_s1 + $0x28] sm:$0xff]  ;;  %v271_v28 = vld [vmem:[%s1379_s1 + $0x20] sm:$0xff] }
  0x14   : > { %520 = vmatpush.msra.mxu1 %v1012_v11  ;;  %838 = vmatmul.msk.f32.vlgmr.msra.gmra.mxu2 %vm307_vm0, %v173_v13  ;;  %v1077_v25 = vld [vmem:[%s1379_s1 + $0xb0] sm:$0xff]  ;;  %v1086_v27 = vld [vmem:[%s1379_s1 + $0xa8] sm:$0xff]  ;;  %v1095_v29 = vld [vmem:[%s1379_s1 + $0xa0] sm:$0xff] }
  0x15   : > { %408 = vmatpush.msra.mxu0 %v278_v12  ;;  %877 = vmatpush.msra.mxu3 %v278_v12  ;;  %v179_v30 = vld [vmem:[%s1019_s16 + $0x40] sm:$0xff]  ;;  %v270_v31 = vld [vmem:[%s1379_s1 + $0x18] sm:$0xff]  ;;  %v269_v33 = vld [vmem:[%s1379_s1 + $0x10] sm:$0xff] }
  0x16   : > { %521 = vmatpush.msra.mxu1 %v1028_v14  ;;  %v1105_v32 = vld [vmem:[%s1379_s1 + $0x98] sm:$0xff]  ;;  %v285_v34 = vld [vmem:[%s1379_s1 + $0x90] sm:$0xff]  ;;  %v268_v35 = vld [vmem:[%s1379_s1 + $0x8] sm:$0xff] }
  0x17   : > { %409 = vmatpush.msra.mxu0 %v277_v15  ;;  %878 = vmatpush.msra.mxu3 %v277_v15  ;;  %v284_v36 = vld [vmem:[%s1379_s1 + $0x88] sm:$0xff]  ;;  %v267_v37 = vld [vmem:[%s1379_s1] sm:$0xff]  ;;  %v182_v40 = vld [vmem:[%s1019_s16 + $0x58] sm:$0xff] }
  0x18   : > { %522 = vmatpush.msra.mxu1 %v1039_v16  ;;  %v171_v38 = vld [vmem:[%s1019_s16] sm:$0xff]  ;;  %v172_v42 = vld [vmem:[%s1019_s16 + $0x8] sm:$0xff]  ;;  %v174_v43 = vld [vmem:[%s1019_s16 + $0x18] sm:$0xff] }
  0x19   : > { %410 = vmatpush.msra.mxu0 %v276_v17  ;;  %879 = vmatpush.msra.mxu3 %v276_v17  ;;  %v243_v39 = vld [vmem:[%s1019_s16 + $0x240] sm:$0xff]  ;;  %v246_v44 = vld [vmem:[%s1019_s16 + $0x258] sm:$0xff]  ;;  %v185_v45 = vld [vmem:[%s1019_s16 + $0x70] sm:$0xff] }
  0x1a   : > { %523 = vmatpush.msra.mxu1 %v1048_v18  ;;  %v283_v41 = vld [vmem:[%s1379_s1 + $0x80] sm:$0xff]  ;;  %v177_v47 = vld [vmem:[%s1019_s16 + $0x30] sm:$0xff]  ;;  %v188_v49 = vld [vmem:[%s1019_s16 + $0x88] sm:$0xff] }
  0x1b   : > { %411 = vmatpush.msra.mxu0 %v275_v19  ;;  %880 = vmatpush.msra.mxu3 %v275_v19  ;;  %v175_v46 = vld [vmem:[%s1019_s16 + $0x20] sm:$0xff]  ;;  %v249_v48 = vld [vmem:[%s1019_s16 + $0x270] sm:$0xff]  ;;  %v178_v50 = vld [vmem:[%s1019_s16 + $0x38] sm:$0xff] }
  0x1c   : > { %524 = vmatpush.msra.mxu1 %v1057_v20  ;;  %839 = vmatmul.msk.f32.gmra.mxu2 %vm307_vm0, %v176_v21  ;;  %v180_v51 = vld [vmem:[%s1019_s16 + $0x48] sm:$0xff]  ;;  %v191_v53 = vld [vmem:[%s1019_s16 + $0xa0] sm:$0xff]  ;;  %v181_v54 = vld [vmem:[%s1019_s16 + $0x50] sm:$0xff] }
  0x1d   : > { %412 = vmatpush.msra.mxu0 %v274_v22  ;;  %881 = vmatpush.msra.mxu3 %v274_v22  ;;  %v252_v52 = vld [vmem:[%s1019_s16 + $0x288] sm:$0xff]  ;;  %v183_v55 = vld [vmem:[%s1019_s16 + $0x60] sm:$0xff]  ;;  %v194_v57 = vld [vmem:[%s1019_s16 + $0xb8] sm:$0xff] }
  0x1e   : > { %525 = vmatpush.msra.mxu1 %v1067_v23  ;;  %v255_v56 = vld [vmem:[%s1019_s16 + $0x2a0] sm:$0xff]  ;;  %v184_v58 = vld [vmem:[%s1019_s16 + $0x68] sm:$0xff]  ;;  %v186_v59 = vld [vmem:[%s1019_s16 + $0x78] sm:$0xff] }
  0x1f   : > { %413 = vmatpush.msra.mxu0 %v273_v24  ;;  %882 = vmatpush.msra.mxu3 %v273_v24  ;;  %v258_v60 = vld [vmem:[%s1019_s16 + $0x2b8] sm:$0xff]  ;;  %v197_v61 = vld [vmem:[%s1019_s16 + $0xd0] sm:$0xff]  ;;  %v187_v62 = vld [vmem:[%s1019_s16 + $0x80] sm:$0xff] }
  0x20   : > { %526 = vmatpush.msra.mxu1 %v1077_v25  ;;  %v189_v63 = vld [vmem:[%s1019_s16 + $0x90] sm:$0xff]  ;;  %v190_v2 = vld [vmem:[%s1019_s16 + $0x98] sm:$0xff]  ;;  %v203_v5 = vld [vmem:[%s1019_s16 + $0x100] sm:$0xff] }
  0x21   : > { %414 = vmatpush.msra.mxu0 %v272_v26  ;;  %883 = vmatpush.msra.mxu3 %v272_v26  ;;  %v261_v0 = vld [vmem:[%s1019_s16 + $0x2d0] sm:$0xff]  ;;  %v206_v9 = vld [vmem:[%s1019_s16 + $0x118] sm:$0xff]  ;;  %v247_v12 = vld [vmem:[%s1019_s16 + $0x260] sm:$0xff] }
  0x22   : > { %527 = vmatpush.msra.mxu1 %v1086_v27  ;;  %v209_v13 = vld [vmem:[%s1019_s16 + $0x130] sm:$0xff]  ;;  %v212_v17 = vld [vmem:[%s1019_s16 + $0x148] sm:$0xff]  ;;  %v215_v21 = vld [vmem:[%s1019_s16 + $0x160] sm:$0xff] }
  0x23   : > { %415 = vmatpush.msra.mxu0 %v271_v28  ;;  %884 = vmatpush.msra.mxu3 %v271_v28  ;;  %v201_v15 = vld [vmem:[%s1019_s16 + $0xf0] sm:$0xff]  ;;  %v204_v19 = vld [vmem:[%s1019_s16 + $0x108] sm:$0xff]  ;;  %v259_v28 = vld [vmem:[%s1019_s16 + $0x2c0] sm:$0xff] }
  0x24   : > { %528 = vmatpush.msra.mxu1 %v1095_v29  ;;  %840 = vmatmul.msk.f32.gmra.mxu2 %vm307_vm0, %v179_v30  ;;  %v205_v22 = vld [vmem:[%s1019_s16 + $0x110] sm:$0xff]  ;;  %v256_v24 = vld [vmem:[%s1019_s16 + $0x2a8] sm:$0xff]  ;;  %v211_v30 = vld [vmem:[%s1019_s16 + $0x140] sm:$0xff] }
  0x25   : > { %416 = vmatpush.msra.mxu0 %v270_v31  ;;  %885 = vmatpush.msra.mxu3 %v270_v31  ;;  %v208_v26 = vld [vmem:[%s1019_s16 + $0x128] sm:$0xff] }
  0x26   : > { %529 = vmatpush.msra.mxu1 %v1105_v32 }
  0x27   : > { %417 = vmatpush.msra.mxu0 %v269_v33  ;;  %886 = vmatpush.msra.mxu3 %v269_v33  ;;  %v262_v33 = vld [vmem:[%s1019_s16 + $0x2d8] sm:$0xff] }
  0x28   : > { %530 = vmatpush.msra.mxu1 %v285_v34 }
  0x29   : > { %418 = vmatpush.msra.mxu0 %v268_v35  ;;  %887 = vmatpush.msra.mxu3 %v268_v35  ;;  %v214_v35 = vld [vmem:[%s1019_s16 + $0x158] sm:$0xff] }
  0x2a   : > { %531 = vmatpush.msra.mxu1 %v284_v36 }
  0x2b   : > { %419 = vmatpush.msra.mxu0 %v267_v37  ;;  %888 = vmatpush.msra.mxu3 %v267_v37  ;;  %v216_v37 = vld [vmem:[%s1019_s16 + $0x168] sm:$0xff] }
  0x2c   : > { %420 = vmatmul.f32.vlgmr.msra.gmra.mxu0 %v171_v38  ;;  %492 = vmatmul.f32.vlgmr.msra.gmra.mxu3 %v243_v39  ;;  %v265_v38 = vld [vmem:[%s1019_s16 + $0x2f0] sm:$0xff]  ;;  %v227_v39 = vld [vmem:[%s1019_s16 + $0x1c0] sm:$0xff] }
  0x2d   : > { %841 = vmatmul.msk.f32.gmra.mxu2 %vm307_vm0, %v182_v40  ;;  %532 = vmatpush.msra.mxu1 %v283_v41  ;;  %v217_v40 = vld [vmem:[%s1019_s16 + $0x170] sm:$0xff] }
  0x2e   : > { %889 = vmatpush.msrb.mxu3 %v969_v3  ;;  %533 = vmatmul.f32.vlgmr.msra.gmra.mxu1 %v172_v42  ;;  %v192_v3 = vld [vmem:[%s1019_s16 + $0xa8] sm:$0xff] }
  0x30   : > { %890 = vmatpush.msrb.mxu3 %v984_v6  ;;  %v193_v6 = vld [vmem:[%s1019_s16 + $0xb0] sm:$0xff] }
  0x32   : > { %891 = vmatpush.msrb.mxu3 %v996_v8  ;;  %v244_v8 = vld [vmem:[%s1019_s16 + $0x248] sm:$0xff] }
  0x34   : > { %423 = vmatmul.f32.gmra.mxu0 %v174_v43  ;;  %892 = vmatpush.msrb.mxu3 %v1012_v11  ;;  %v198_v11 = vld [vmem:[%s1019_s16 + $0xd8] sm:$0xff] }
  0x35   : > { %495 = vmatmul.f32.gmra.mxu3 %v246_v44  ;;  %842 = vmatmul.msk.f32.gmra.mxu2 %vm307_vm0, %v185_v45  ;;  %v219_v44 = vld [vmem:[%s1019_s16 + $0x180] sm:$0xff] }
  0x36   : > { %893 = vmatpush.msrb.mxu3 %v1028_v14  ;;  %536 = vmatmul.f32.gmra.mxu1 %v175_v46  ;;  %v199_v14 = vld [vmem:[%s1019_s16 + $0xe0] sm:$0xff]  ;;  %v230_v46 = vld [vmem:[%s1019_s16 + $0x1d8] sm:$0xff] }
  0x38   : > { %894 = vmatpush.msrb.mxu3 %v1039_v16  ;;  %v250_v16 = vld [vmem:[%s1019_s16 + $0x278] sm:$0xff] }
  0x3a   : > { %895 = vmatpush.msrb.mxu3 %v1048_v18  ;;  %v202_v18 = vld [vmem:[%s1019_s16 + $0xf8] sm:$0xff] }
  0x3c   : > { %426 = vmatmul.f32.gmra.mxu0 %v177_v47  ;;  %896 = vmatpush.msrb.mxu3 %v1057_v20  ;;  %v253_v20 = vld [vmem:[%s1019_s16 + $0x290] sm:$0xff]  ;;  %v254_v47 = vld [vmem:[%s1019_s16 + $0x298] sm:$0xff] }
  0x3d   : > { %498 = vmatmul.f32.gmra.mxu3 %v249_v48  ;;  %843 = vmatmul.msk.f32.gmra.mxu2 %vm307_vm0, %v188_v49  ;;  %v220_v49 = vld [vmem:[%s1019_s16 + $0x188] sm:$0xff] }
  0x3e   : > { %897 = vmatpush.msrb.mxu3 %v1067_v23  ;;  %539 = vmatmul.f32.gmra.mxu1 %v178_v50  ;;  %v207_v23 = vld [vmem:[%s1019_s16 + $0x120] sm:$0xff] }
  0x40   : > { %898 = vmatpush.msrb.mxu3 %v1077_v25  ;;  %v218_v25 = vld [vmem:[%s1019_s16 + $0x178] sm:$0xff] }
  0x42   : > { %899 = vmatpush.msrb.mxu3 %v1086_v27  ;;  %v210_v27 = vld [vmem:[%s1019_s16 + $0x138] sm:$0xff] }
  0x44   : > { %429 = vmatmul.f32.gmra.mxu0 %v180_v51  ;;  %900 = vmatpush.msrb.mxu3 %v1095_v29  ;;  %v221_v29 = vld [vmem:[%s1019_s16 + $0x190] sm:$0xff] }
  0x45   : > { %501 = vmatmul.f32.gmra.mxu3 %v252_v52  ;;  %844 = vmatmul.msk.f32.gmra.mxu2 %vm307_vm0, %v191_v53 }
  0x46   : > { %901 = vmatpush.msrb.mxu3 %v1105_v32  ;;  %542 = vmatmul.f32.gmra.mxu1 %v181_v54  ;;  %v213_v32 = vld [vmem:[%s1019_s16 + $0x150] sm:$0xff] }
  0x48   : > { %902 = vmatpush.msrb.mxu3 %v285_v34  ;;  %v224_v34 = vld [vmem:[%s1019_s16 + $0x1a8] sm:$0xff] }
  0x4a   : > { %903 = vmatpush.msrb.mxu3 %v284_v36 }
  0x4c   : > { %432 = vmatmul.f32.gmra.mxu0 %v183_v55  ;;  %904 = vmatpush.msrb.mxu3 %v283_v41  ;;  %v1228_v41 = vld [vmem:[%s1380_s2] ss:$0 sm:$0xff]  ;;  %v222_v55 = vld [vmem:[%s1019_s16 + $0x198] sm:$0xff] }
  0x4d   : > { %504 = vmatmul.f32.gmra.mxu3 %v255_v56  ;;  %845 = vmatmul.msk.f32.gmra.mxu2 %vm307_vm0, %v194_v57  ;;  %v233_v57 = vld [vmem:[%s1019_s16 + $0x1f0] sm:$0xff] }
  0x4e   : > { %905 = vmatpush.msra.mxu3 %v961_v1  ;;  %545 = vmatmul.f32.gmra.mxu1 %v184_v58  ;;  %v200_v1 = vld [vmem:[%s1019_s16 + $0xe8] sm:$0xff]  ;;  %v257_v58 = vld [vmem:[%s1019_s16 + $0x2b0] sm:$0xff] }
  0x50   : > { %906 = vmatpush.msra.mxu3 %v974_v4  ;;  %v264_v4 = vld [vmem:[%s1019_s16 + $0x2e8] sm:$0xff] }
  0x52   : > { %907 = vmatpush.msra.mxu3 %v991_v7  ;;  %v195_v7 = vld [vmem:[%s1019_s16 + $0xc0] sm:$0xff] }
  0x54   : > { %435 = vmatmul.f32.gmra.mxu0 %v186_v59  ;;  %908 = vmatpush.msra.mxu3 %v1007_v10  ;;  %v196_v10 = vld [vmem:[%s1019_s16 + $0xc8] sm:$0xff] }
  0x55   : > { %507 = vmatmul.f32.gmra.mxu3 %v258_v60  ;;  %846 = vmatmul.msk.f32.gmra.mxu2 %vm307_vm0, %v197_v61  ;;  %v223_v60 = vld [vmem:[%s1019_s16 + $0x1a0] sm:$0xff] }
  0x56   : > { %548 = vmatmul.f32.gmra.mxu1 %v187_v62 }
  0x5c   : > { %438 = vmatmul.f32.gmra.mxu0 %v189_v63 }
  0x5d   : > { %510 = vmatmul.f32.gmra.mxu3 %v261_v0  ;;  %847 = vmatmul.msk.f32.gmra.mxu2 %vm307_vm0, %v200_v1 }
  0x5e   : > { %551 = vmatmul.f32.gmra.mxu1 %v190_v2  ;;  %v225_v2 = vld [vmem:[%s1019_s16 + $0x1b0] sm:$0xff] }
  0x64   : > { %441 = vmatmul.f32.gmra.mxu0 %v192_v3 }
  0x65   : > { %513 = vmatmul.f32.gmra.mxu3 %v264_v4  ;;  %848 = vmatmul.msk.f32.gmra.mxu2 %vm307_vm0, %v203_v5  ;;  %v236_v4 = vld [vmem:[%s1019_s16 + $0x208] sm:$0xff] }
  0x66   : > { %554 = vmatmul.f32.gmra.mxu1 %v193_v6  ;;  %v260_v5 = vld [vmem:[%s1019_s16 + $0x2c8] sm:$0xff] }
  0x6c   : > { %444 = vmatmul.f32.gmra.mxu0 %v195_v7  ;;  %v226_v7 = vld [vmem:[%s1019_s16 + $0x1b8] sm:$0xff] }
  0x6d   : > { %605 = vmatmul.f32.vlgmr.msrb.gmra.mxu3 %v244_v8  ;;  %849 = vmatmul.msk.f32.gmra.mxu2 %vm307_vm0, %v206_v9 }
  0x6e   : > { %557 = vmatmul.f32.gmra.mxu1 %v196_v10 }
  0x74   : > { %447 = vmatmul.f32.gmra.mxu0 %v198_v11 }
  0x75   : > { %608 = vmatmul.f32.gmra.mxu3 %v247_v12  ;;  %850 = vmatmul.msk.f32.gmra.mxu2 %vm307_vm0, %v209_v13  ;;  %v228_v13 = vld [vmem:[%s1019_s16 + $0x1c8] sm:$0xff] }
  0x76   : > { %560 = vmatmul.f32.gmra.mxu1 %v199_v14 }
  0x7c   : > { %450 = vmatmul.f32.gmra.mxu0 %v201_v15  ;;  %v239_v15 = vld [vmem:[%s1019_s16 + $0x220] sm:$0xff] }
  0x7d   : > { %611 = vmatmul.f32.gmra.mxu3 %v250_v16  ;;  %851 = vmatmul.msk.f32.gmra.mxu2 %vm307_vm0, %v212_v17  ;;  %v263_v16 = vld [vmem:[%s1019_s16 + $0x2e0] sm:$0xff] }
  0x7e   : > { %563 = vmatmul.f32.gmra.mxu1 %v202_v18  ;;  %v229_v18 = vld [vmem:[%s1019_s16 + $0x1d0] sm:$0xff] }
  0x84   : > { %453 = vmatmul.f32.gmra.mxu0 %v204_v19 }
  0x85   : > { %614 = vmatmul.f32.gmra.mxu3 %v253_v20  ;;  %852 = vmatmul.msk.f32.gmra.mxu2 %vm307_vm0, %v215_v21 }
  0x86   : > { %566 = vmatmul.f32.gmra.mxu1 %v205_v22 }
  0x8c   : > { %456 = vmatmul.f32.gmra.mxu0 %v207_v23 }
  0x8d   : > { %617 = vmatmul.f32.gmra.mxu3 %v256_v24  ;;  %853 = vmatmul.msk.f32.gmra.mxu2 %vm307_vm0, %v218_v25  ;;  %v231_v24 = vld [vmem:[%s1019_s16 + $0x1e0] sm:$0xff] }
  0x8e   : > { %569 = vmatmul.f32.gmra.mxu1 %v208_v26  ;;  %v242_v26 = vld [vmem:[%s1019_s16 + $0x238] sm:$0xff] }
  0x94   : > { %459 = vmatmul.f32.gmra.mxu0 %v210_v27  ;;  %v266_v27 = vld [vmem:[%s1019_s16 + $0x2f8] sm:$0xff] }
  0x95   : > { %620 = vmatmul.f32.gmra.mxu3 %v259_v28  ;;  %854 = vmatmul.msk.f32.gmra.mxu2 %vm307_vm0, %v221_v29  ;;  %v232_v29 = vld [vmem:[%s1019_s16 + $0x1e8] sm:$0xff] }
  0x96   : > { %572 = vmatmul.f32.gmra.mxu1 %v211_v30 }
  0x97   : > { %v647_v31 = vpop.f32.mrf.mxu2 }
  0x9c   : > { %462 = vmatmul.f32.gmra.mxu0 %v213_v32 }
  0x9d   : > { %623 = vmatmul.f32.gmra.mxu3 %v262_v33  ;;  %855 = vmatmul.msk.f32.gmra.mxu2 %vm307_vm0, %v224_v34 }
  0x9e   : > { %575 = vmatmul.f32.gmra.mxu1 %v214_v35  ;;  %v234_v35 = vld [vmem:[%s1019_s16 + $0x1f8] sm:$0xff] }
  0x9f   : > { %v650_v36 = vpop.f32.mrf.mxu2 }
  0xa4   : > { %465 = vmatmul.f32.gmra.mxu0 %v216_v37  ;;  %v245_v37 = vld [vmem:[%s1019_s16 + $0x250] sm:$0xff] }
  0xa5   : > { %626 = vmatmul.f32.gmra.mxu3 %v265_v38  ;;  %856 = vmatmul.msk.f32.gmra.mxu2 %vm307_vm0, %v227_v39  ;;  %v235_v39 = vld [vmem:[%s1019_s16 + $0x200] sm:$0xff] }
  0xa6   : > { %578 = vmatmul.f32.gmra.mxu1 %v217_v40 }
  0xa7   : > { %v653_v42 = vpop.f32.mrf.mxu2 }
  0xa9   : > { %v421_v43 = vpop.f32.mrf.mxu0 }
  0xaa   : > { %v422_v45 = vadd.f32 %v1228_v41, %v421_v43 }
  0xab   : > { %v534_v48 = vpop.f32.mrf.mxu1 }
  0xac   : > { %468 = vmatmul.f32.gmra.mxu0 %v219_v44  ;;  %v535_v50 = vadd.f32 %v534_v48, %v422_v45  ;;  %v248_v48 = vld [vmem:[%s1019_s16 + $0x268] sm:$0xff] }
  0xad   : > { %857 = vmatmul.msk.f32.gmra.mxu2 %vm307_vm0, %v230_v46  ;;  %865 = vmatmul.msk.f32.vlgmr.msra.gmra.mxu3 %vm307_vm0, %v254_v47  ;;  %v237_v46 = vld [vmem:[%s1019_s16 + $0x210] sm:$0xff] }
  0xae   : > { %v648_v51 = vadd.f32 %v647_v31, %v535_v50  ;;  %581 = vmatmul.f32.gmra.mxu1 %v220_v49  ;;  %v238_v50 = vld [vmem:[%s1019_s16 + $0x218] sm:$0xff] }
  0xaf   : > { %v1243_v52 = vpop.f32.mrf.mxu3 }
  0xb0   : > { %v656_v53 = vpop.f32.mrf.mxu2  ;;  %743 = vst [vmem:[%s1241_s22] sm:$0xff] %v648_v51 }
  0xb1   : > { %v424_v54 = vpop.f32.mrf.mxu0 }
  0xb2   : > { %v425_v56 = vadd.f32 %v1228_v41, %v424_v54 }
  0xb3   : > { %v537_v59 = vpop.f32.mrf.mxu1 }
  0xb4   : > { %471 = vmatmul.f32.gmra.mxu0 %v222_v55  ;;  %v538_v61 = vadd.f32 %v537_v59, %v425_v56  ;;  %v251_v59 = vld [vmem:[%s1019_s16 + $0x280] sm:$0xff] }
  0xb5   : > { %858 = vmatmul.msk.f32.gmra.mxu2 %vm307_vm0, %v233_v57  ;;  %866 = vmatmul.msk.f32.gmra.mxu3 %vm307_vm0, %v257_v58  ;;  %v240_v57 = vld [vmem:[%s1019_s16 + $0x228] sm:$0xff] }
  0xb6   : > { %v651_v62 = vadd.f32 %v650_v36, %v538_v61  ;;  %584 = vmatmul.f32.gmra.mxu1 %v223_v60  ;;  %v241_v61 = vld [vmem:[%s1019_s16 + $0x230] sm:$0xff] }
  0xb8   : > { %v1253_v63 = vpop.f32.mrf.mxu3  ;;  %v659_v0 = vpop.f32.mrf.mxu2  ;;  %744 = vst [vmem:[%s1241_s22 + $0x8] sm:$0xff] %v651_v62 }
  0xb9   : > { %v427_v1 = vpop.f32.mrf.mxu0 }
  0xba   : > { %v428_v3 = vadd.f32 %v1228_v41, %v427_v1 }
  0xbb   : > { %v540_v6 = vpop.f32.mrf.mxu1 }
  0xbc   : > { %474 = vmatmul.f32.gmra.mxu0 %v225_v2  ;;  %v541_v8 = vadd.f32 %v540_v6, %v428_v3 }
  0xbd   : > { %859 = vmatmul.msk.f32.gmra.mxu2 %vm307_vm0, %v236_v4  ;;  %867 = vmatmul.msk.f32.gmra.mxu3 %vm307_vm0, %v260_v5 }
  0xbe   : > { %v654_v9 = vadd.f32 %v653_v42, %v541_v8  ;;  %587 = vmatmul.f32.gmra.mxu1 %v226_v7  ;;  %v494_v7 = vadd.f32 %v1228_v41, %v1243_v52 }
  0xc0   : > { %v1263_v10 = vpop.f32.mrf.mxu3  ;;  %v662_v11 = vpop.f32.mrf.mxu2  ;;  %745 = vst [vmem:[%s1241_s22 + $0x10] sm:$0xff] %v654_v9 }
  0xc1   : > { %v430_v12 = vpop.f32.mrf.mxu0 }
  0xc2   : > { %v431_v14 = vadd.f32 %v1228_v41, %v430_v12 }
  0xc3   : > { %v543_v17 = vpop.f32.mrf.mxu1 }
  0xc4   : > { %477 = vmatmul.f32.gmra.mxu0 %v228_v13  ;;  %v544_v19 = vadd.f32 %v543_v17, %v431_v14  ;;  %v497_v17 = vadd.f32 %v1228_v41, %v1253_v63 }
  0xc5   : > { %860 = vmatmul.msk.f32.gmra.mxu2 %vm307_vm0, %v239_v15  ;;  %868 = vmatmul.msk.f32.gmra.mxu3 %vm307_vm0, %v263_v16 }
  0xc6   : > { %v657_v20 = vadd.f32 %v656_v53, %v544_v19  ;;  %590 = vmatmul.f32.gmra.mxu1 %v229_v18 }
  0xc8   : > { %v1273_v21 = vpop.f32.mrf.mxu3  ;;  %v665_v22 = vpop.f32.mrf.mxu2  ;;  %746 = vst [vmem:[%s1241_s22 + $0x18] sm:$0xff] %v657_v20 }
  0xc9   : > { %v433_v23 = vpop.f32.mrf.mxu0 }
  0xca   : > { %v434_v25 = vadd.f32 %v1228_v41, %v433_v23 }
  0xcb   : > { %v546_v28 = vpop.f32.mrf.mxu1 }
  0xcc   : > { %480 = vmatmul.f32.gmra.mxu0 %v231_v24  ;;  %v547_v30 = vadd.f32 %v546_v28, %v434_v25 }
  0xcd   : > { %861 = vmatmul.msk.f32.gmra.mxu2 %vm307_vm0, %v242_v26  ;;  %869 = vmatmul.msk.f32.gmra.mxu3 %vm307_vm0, %v266_v27  ;;  %v500_v26 = vadd.f32 %v1228_v41, %v1263_v10 }
  0xce   : > { %v660_v31 = vadd.f32 %v659_v0, %v547_v30  ;;  %593 = vmatmul.f32.gmra.mxu1 %v232_v29 }
  0xd0   : > { %v1283_v32 = vpop.f32.mrf.mxu3  ;;  %v668_v33 = vpop.f32.mrf.mxu2  ;;  %747 = vst [vmem:[%s1241_s22 + $0x20] sm:$0xff] %v660_v31 }
  0xd1   : > { %v436_v34 = vpop.f32.mrf.mxu0 }
  0xd2   : > { %v437_v36 = vadd.f32 %v1228_v41, %v436_v34 }
  0xd3   : > { %v549_v38 = vpop.f32.mrf.mxu1 }
  0xd4   : > { %483 = vmatmul.f32.gmra.mxu0 %v234_v35  ;;  %v550_v40 = vadd.f32 %v549_v38, %v437_v36 }
  0xd5   : > { %862 = vmatmul.msk.f32.gmra.mxu2 %vm307_vm0, %v245_v37 }
  0xd6   : > { %v663_v42 = vadd.f32 %v662_v11, %v550_v40  ;;  %596 = vmatmul.f32.gmra.mxu1 %v235_v39 }
  0xd8   : > { %v1291_v43 = vpop.f32.mrf.mxu3  ;;  %v671_v44 = vpop.f32.mrf.mxu2  ;;  %748 = vst [vmem:[%s1241_s22 + $0x28] sm:$0xff] %v663_v42 }
  0xd9   : > { %v439_v45 = vpop.f32.mrf.mxu0 }
  0xda   : > { %v440_v47 = vadd.f32 %v1228_v41, %v439_v45 }
  0xdb   : > { %v552_v49 = vpop.f32.mrf.mxu1 }
  0xdc   : > { %486 = vmatmul.f32.gmra.mxu0 %v237_v46  ;;  %v553_v51 = vadd.f32 %v552_v49, %v440_v47 }
  0xdd   : > { %863 = vmatmul.msk.f32.gmra.mxu2 %vm307_vm0, %v248_v48 }
  0xde   : > { %v666_v53 = vadd.f32 %v665_v22, %v553_v51  ;;  %599 = vmatmul.f32.gmra.mxu1 %v238_v50 }
  0xe0   : > { %v1299_v54 = vpop.f32.mrf.mxu3  ;;  %v674_v55 = vpop.f32.mrf.mxu2  ;;  %749 = vst [vmem:[%s1241_s22 + $0x30] sm:$0xff] %v666_v53 }
  0xe1   : > { %v442_v56 = vpop.f32.mrf.mxu0 }
  0xe2   : > { %v443_v58 = vadd.f32 %v1228_v41, %v442_v56 }
  0xe3   : > { %v555_v60 = vpop.f32.mrf.mxu1 }
  0xe4   : > { %489 = vmatmul.f32.gmra.mxu0 %v240_v57  ;;  %v556_v62 = vadd.f32 %v555_v60, %v443_v58 }
  0xe5   : > { %864 = vmatmul.msk.f32.gmra.mxu2 %vm307_vm0, %v251_v59 }
  0xe6   : > { %v669_v0 = vadd.f32 %v668_v33, %v556_v62  ;;  %602 = vmatmul.f32.gmra.mxu1 %v241_v61 }
  0xe8   : > { %v1307_v1 = vpop.f32.mrf.mxu3  ;;  %v677_v2 = vpop.f32.mrf.mxu2  ;;  %750 = vst [vmem:[%s1241_s22 + $0x38] sm:$0xff] %v669_v0 }
  0xe9   : > { %v445_v3 = vpop.f32.mrf.mxu0 }
  0xea   : > { %v446_v4 = vadd.f32 %v1228_v41, %v445_v3 }
  0xeb   : > { %v558_v5 = vpop.f32.mrf.mxu1 }
  0xec   : > { %v559_v6 = vadd.f32 %v558_v5, %v446_v4 }
  0xee   : > { %v672_v8 = vadd.f32 %v671_v44, %v559_v6 }
  0xf0   : > { %v606_v9 = vpop.f32.mrf.mxu3  ;;  %v680_v11 = vpop.f32.mrf.mxu2  ;;  %751 = vst [vmem:[%s1241_s22 + $0x40] sm:$0xff] %v672_v8 }
  0xf1   : > { %v1314_v12 = vadd.f32 %v606_v9, %v494_v7  ;;  %v448_v13 = vpop.f32.mrf.mxu0 }
  0xf2   : > { %v449_v14 = vadd.f32 %v1228_v41, %v448_v13 }
  0xf3   : > { %v561_v15 = vpop.f32.mrf.mxu1 }
  0xf4   : > { %v562_v16 = vadd.f32 %v561_v15, %v449_v14 }
  0xf6   : > { %v675_v18 = vadd.f32 %v674_v55, %v562_v16 }
  0xf8   : > { %v609_v19 = vpop.f32.mrf.mxu3  ;;  %v683_v20 = vpop.f32.mrf.mxu2  ;;  %752 = vst [vmem:[%s1241_s22 + $0x48] sm:$0xff] %v675_v18 }
  0xf9   : > { %v1320_v52 = vadd.f32 %v609_v19, %v497_v17  ;;  %v451_v22 = vpop.f32.mrf.mxu0 }
  0xfa   : > { %v452_v23 = vadd.f32 %v1228_v41, %v451_v22 }
  0xfb   : > { %v564_v24 = vpop.f32.mrf.mxu1 }
  0xfc   : > { %v565_v25 = vadd.f32 %v564_v24, %v452_v23  ;;  %v506_v23 = vadd.f32 %v1228_v41, %v1283_v32 }
  0xfe   : > { %v678_v27 = vadd.f32 %v677_v2, %v565_v25 }
 0x100   : > { %v612_v28 = vpop.f32.mrf.mxu3  ;;  %v686_v29 = vpop.f32.mrf.mxu2  ;;  %753 = vst [vmem:[%s1241_s22 + $0x50] sm:$0xff] %v678_v27 }
 0x101   : > { %v1326_v63 = vadd.f32 %v612_v28, %v500_v26  ;;  %v454_v30 = vpop.f32.mrf.mxu0 }
 0x102   : > { %v455_v31 = vadd.f32 %v1228_v41, %v454_v30 }
 0x103   : > { %v567_v33 = vpop.f32.mrf.mxu1 }
 0x104   : > { %v568_v34 = vadd.f32 %v567_v33, %v455_v31  ;;  %v509_v33 = vadd.f32 %v1228_v41, %v1291_v43 }
 0x106   : > { %v681_v35 = vadd.f32 %v680_v11, %v568_v34  ;;  %v503_v11 = vadd.f32 %v1228_v41, %v1273_v21 }
 0x108   : > { %v615_v36 = vpop.f32.mrf.mxu3  ;;  %v689_v37 = vpop.f32.mrf.mxu2  ;;  %754 = vst [vmem:[%s1241_s22 + $0x58] sm:$0xff] %v681_v35 }
 0x109   : > { %v457_v38 = vpop.f32.mrf.mxu0  ;;  %v616_v14 = vadd.f32 %v615_v36, %v503_v11 }
 0x10a   : > { %v458_v10 = vadd.f32 %v1228_v41, %v457_v38 }
 0x10b   : > { %v570_v39 = vpop.f32.mrf.mxu1 }
 0x10c   : > { %v571_v40 = vadd.f32 %v570_v39, %v458_v10 }
 0x10e   : > { %v684_v42 = vadd.f32 %v683_v20, %v571_v40 }
 0x110   : > { %v618_v44 = vpop.f32.mrf.mxu3  ;;  %v692_v45 = vpop.f32.mrf.mxu2  ;;  %755 = vst [vmem:[%s1241_s22 + $0x60] sm:$0xff] %v684_v42  ;;  %v512_v42 = vadd.f32 %v1228_v41, %v1299_v54 }
 0x111   : > { %v460_v46 = vpop.f32.mrf.mxu0  ;;  %v619_v25 = vadd.f32 %v618_v44, %v506_v23 }
 0x112   : > { %v461_v47 = vadd.f32 %v1228_v41, %v460_v46 }
 0x113   : > { %v573_v48 = vpop.f32.mrf.mxu1 }
 0x114   : > { %v574_v49 = vadd.f32 %v573_v48, %v461_v47 }
 0x116   : > { %v687_v50 = vadd.f32 %v686_v29, %v574_v49 }
 0x118   : > { %v621_v51 = vpop.f32.mrf.mxu3  ;;  %v695_v53 = vpop.f32.mrf.mxu2  ;;  %756 = vst [vmem:[%s1241_s22 + $0x68] sm:$0xff] %v687_v50 }
 0x119   : > { %v463_v55 = vpop.f32.mrf.mxu0  ;;  %v622_v35 = vadd.f32 %v621_v51, %v509_v33 }
 0x11a   : > { %v464_v56 = vadd.f32 %v1228_v41, %v463_v55 }
 0x11b   : > { %v576_v57 = vpop.f32.mrf.mxu1 }
 0x11c   : > { %v577_v58 = vadd.f32 %v576_v57, %v464_v56 }
 0x11e   : > { %v690_v59 = vadd.f32 %v689_v37, %v577_v58 }
 0x120   : > { %v624_v60 = vpop.f32.mrf.mxu3  ;;  %v698_v61 = vpop.f32.mrf.mxu2  ;;  %757 = vst [vmem:[%s1241_s22 + $0x70] sm:$0xff] %v690_v59 }
 0x121   : > { %v466_v62 = vpop.f32.mrf.mxu0 }
 0x122   : > { %v467_v0 = vadd.f32 %v1228_v41, %v466_v62 }
 0x123   : > { %v579_v2 = vpop.f32.mrf.mxu1 }
 0x124   : > { %v580_v3 = vadd.f32 %v579_v2, %v467_v0 }
 0x126   : > { %v693_v4 = vadd.f32 %v692_v45, %v580_v3  ;;  %v625_v45 = vadd.f32 %v624_v60, %v512_v42 }
 0x128   : > { %v627_v5 = vpop.f32.mrf.mxu3  ;;  %v701_v6 = vpop.f32.mrf.mxu2  ;;  %758 = vst [vmem:[%s1241_s22 + $0x78] sm:$0xff] %v693_v4 }
 0x129   : > { %v469_v7 = vpop.f32.mrf.mxu0 }
 0x12a   : > { %v470_v8 = vadd.f32 %v1228_v41, %v469_v7 }
 0x12b   : > { %v582_v9 = vpop.f32.mrf.mxu1 }
 0x12c   : > { %v583_v13 = vadd.f32 %v582_v9, %v470_v8 }
 0x12e   : > { %v696_v15 = vadd.f32 %v695_v53, %v583_v13  ;;  %v515_v53 = vadd.f32 %v1228_v41, %v1307_v1 }
 0x130   : > { %v704_v16 = vpop.f32.mrf.mxu2  ;;  %v728_v17 = vpop.f32.mrf.mxu3  ;;  %759 = vst [vmem:[%s1241_s22 + $0x80] sm:$0xff] %v696_v15  ;;  %v628_v54 = vadd.f32 %v627_v5, %v515_v53 }
 0x131   : > { %v729_v18 = vadd.f32 %v728_v17, %v616_v14  ;;  %v472_v19 = vpop.f32.mrf.mxu0 }
 0x132   : > { %v473_v20 = vadd.f32 %v1228_v41, %v472_v19 }
 0x133   : > { %770 = vst [vmem:[%s1241_s22 + $0xd8] sm:$0xff] %v729_v18  ;;  %v585_v22 = vpop.f32.mrf.mxu1 }
 0x134   : > { %v586_v24 = vadd.f32 %v585_v22, %v473_v20 }
 0x136   : > { %v699_v21 = vadd.f32 %v698_v61, %v586_v24 }
 0x138   : > { %v707_v26 = vpop.f32.mrf.mxu2  ;;  %v731_v27 = vpop.f32.mrf.mxu3  ;;  %760 = vst [vmem:[%s1241_s22 + $0x88] sm:$0xff] %v699_v21 }
 0x139   : > { %v732_v28 = vadd.f32 %v731_v27, %v619_v25  ;;  %v475_v29 = vpop.f32.mrf.mxu0 }
 0x13a   : > { %v476_v30 = vadd.f32 %v1228_v41, %v475_v29 }
 0x13b   : > { %771 = vst [vmem:[%s1241_s22 + $0xe0] sm:$0xff] %v732_v28  ;;  %v588_v31 = vpop.f32.mrf.mxu1 }
 0x13c   : > { %v589_v34 = vadd.f32 %v588_v31, %v476_v30 }
 0x13e   : > { %v702_v32 = vadd.f32 %v701_v6, %v589_v34 }
 0x140   : > { %v710_v36 = vpop.f32.mrf.mxu2  ;;  %v734_v37 = vpop.f32.mrf.mxu3  ;;  %761 = vst [vmem:[%s1241_s22 + $0x90] sm:$0xff] %v702_v32 }
 0x141   : > { %v735_v38 = vadd.f32 %v734_v37, %v622_v35  ;;  %v478_v10 = vpop.f32.mrf.mxu0 }
 0x142   : > { %v479_v39 = vadd.f32 %v1228_v41, %v478_v10 }
 0x143   : > { %772 = vst [vmem:[%s1241_s22 + $0xe8] sm:$0xff] %v735_v38  ;;  %v591_v40 = vpop.f32.mrf.mxu1 }
 0x144   : > { %v592_v44 = vadd.f32 %v591_v40, %v479_v39 }
 0x146   : > { %v705_v43 = vadd.f32 %v704_v16, %v592_v44 }
 0x148   : > { %v713_v46 = vpop.f32.mrf.mxu2  ;;  %v737_v47 = vpop.f32.mrf.mxu3  ;;  %762 = vst [vmem:[%s1241_s22 + $0x98] sm:$0xff] %v705_v43 }
 0x149   : > { %v738_v48 = vadd.f32 %v737_v47, %v625_v45  ;;  %v481_v49 = vpop.f32.mrf.mxu0 }
 0x14a   : > { %v482_v50 = vadd.f32 %v1228_v41, %v481_v49 }
 0x14b   : > { %773 = vst [vmem:[%s1241_s22 + $0xf0] sm:$0xff] %v738_v48  ;;  %v594_v51 = vpop.f32.mrf.mxu1 }
 0x14c   : > { %v595_v55 = vadd.f32 %v594_v51, %v482_v50 }
 0x14e   : > { %v708_v56 = vadd.f32 %v707_v26, %v595_v55 }
 0x150   : > { %v716_v57 = vpop.f32.mrf.mxu2  ;;  %v740_v58 = vpop.f32.mrf.mxu3  ;;  %763 = vst [vmem:[%s1241_s22 + $0xa0] sm:$0xff] %v708_v56 }
 0x151   : > { %v741_v59 = vadd.f32 %v740_v58, %v628_v54  ;;  %v484_v60 = vpop.f32.mrf.mxu0 }
 0x152   : > { %v485_v61 = vadd.f32 %v1228_v41, %v484_v60 }
 0x153   : > { %774 = vst [vmem:[%s1241_s22 + $0xf8] sm:$0xff] %v741_v59  ;;  %v597_v62 = vpop.f32.mrf.mxu1 }
 0x154   : > { %v598_v0 = vadd.f32 %v597_v62, %v485_v61 }
 0x156   : > { %v711_v2 = vadd.f32 %v710_v36, %v598_v0 }
 0x158   : > { %v719_v3 = vpop.f32.mrf.mxu2  ;;  %764 = vst [vmem:[%s1241_s22 + $0xa8] sm:$0xff] %v711_v2 }
 0x159   : > { %v720_v1 = vadd.f32 %v719_v3, %v1314_v12  ;;  %v487_v4 = vpop.f32.mrf.mxu0 }
 0x15a   : > { %v488_v5 = vadd.f32 %v1228_v41, %v487_v4 }
 0x15b   : > { %767 = vst [vmem:[%s1241_s22 + $0xc0] sm:$0xff] %v720_v1  ;;  %v600_v6 = vpop.f32.mrf.mxu1 }
 0x15c   : > { %v601_v7 = vadd.f32 %v600_v6, %v488_v5 }
 0x15e   : > { %v714_v8 = vadd.f32 %v713_v46, %v601_v7 }
 0x160   : > { %v722_v9 = vpop.f32.mrf.mxu2  ;;  %765 = vst [vmem:[%s1241_s22 + $0xb0] sm:$0xff] %v714_v8 }
 0x161   : > { %v723_v11 = vadd.f32 %v722_v9, %v1320_v52  ;;  %v490_v13 = vpop.f32.mrf.mxu0 }
 0x162   : > { %v491_v14 = vadd.f32 %v1228_v41, %v490_v13 }
 0x163   : > { %768 = vst [vmem:[%s1241_s22 + $0xc8] sm:$0xff] %v723_v11  ;;  %v603_v15 = vpop.f32.mrf.mxu1 }
 0x164   : > { %v604_v16 = vadd.f32 %v603_v15, %v491_v14 }
 0x166   : > { %v717_v12 = vadd.f32 %v716_v57, %v604_v16 }
 0x168   : > { %v725_v17 = vpop.f32.mrf.mxu2  ;;  %766 = vst [vmem:[%s1241_s22 + $0xb8] sm:$0xff] %v717_v12 }
 0x169   : > { %v726_v18 = vadd.f32 %v725_v17, %v1326_v63 }
 0x16b   : > { %769 = vst [vmem:[%s1241_s22 + $0xd0] sm:$0xff] %v726_v18 }
 0x16c PF: > { %s13_s12 = sadd.s32 1, %s925_s12  }
 0x16d   : > { %p10_p4 = scmp.ge.s32.totalorder %s13_s12, 4  }
 0x16f   :  { %12 = sbr.rel (!%p10_p4) target bundleno = 1 (0x1), region = 62 }

// kernel: _lambda_.2
= control target key start
LH: loop header
LB: loop body
LE: loop exit
PB: predicated region body
PF: predicated region fallthrough
CT: control target
= control target key end

     0   :  { %s2653_s30 = smov 0   ;;  %s2655_s20 = smov 0   ;;  %s3129_s0 = inlined_call_operand.vmem [shape: f32[2,16,16], index: 0, kind: input, shape index: {}]   ;;  %s3130_s1 = inlined_call_operand.vmem [shape: f32[16,32], index: 1, kind: input, shape index: {}]   ;;  %s3131_s2 = inlined_call_operand.vmem [shape: f32[1,32], index: 2, kind: input, shape index: {}]   ;;  %s3132_s3 = inlined_call_operand.vmem [shape: f32[16,32], index: 3, kind: input, shape index: {}]   ;;  %s3133_s4 = inlined_call_operand.vmem [shape: f32[2,1,32], index: 4, kind: input, shape index: {}]   ;;  %s3134_s5 = inlined_call_operand.vmem [shape: f32[2,1,32], index: 5, kind: input, shape index: {}]   ;;  %s3135_s6 = inlined_call_operand.vmem [shape: f32[2,12,32,8], index: 6, kind: input, shape index: {}]   ;;  %s3136_s7 = inlined_call_operand.vmem [shape: f32[2,4,8,32], index: 7, kind: input, shape index: {}]   ;;  %s3137_s8 = inlined_call_operand.vmem [shape: f32[2,1,32], index: 8, kind: input, shape index: {}]   ;;  %s3138_s9 = inlined_call_operand.vmem [shape: f32[2,1,32], index: 9, kind: input, shape index: {}]   ;;  %s3139_s10 = inlined_call_operand.vmem [shape: f32[2,1,32], index: 10, kind: input, shape index: {}]   ;;  %s3140_s11 = inlined_call_operand.vmem [shape: f32[2,32,64], index: 11, kind: input, shape index: {}]   ;;  %s3141_s12 = inlined_call_operand.vmem [shape: f32[2,1,64], index: 12, kind: input, shape index: {}]   ;;  %s3142_s13 = inlined_call_operand.vmem [shape: f32[2,64,32], index: 13, kind: input, shape index: {}]   ;;  %s3143_s14 = inlined_call_operand.vmem [shape: f32[2,1,32], index: 14, kind: input, shape index: {}]   ;;  %s3144_s15 = inlined_call_operand.vmem [shape: f32[1,32], index: 15, kind: input, shape index: {}]   ;;  %s3145_s16 = inlined_call_operand.vmem [shape: f32[1,32], index: 16, kind: input, shape index: {}]   ;;  %s3146_s17 = inlined_call_operand.vmem [shape: f32[32,512], index: 17, kind: input, shape index: {}]   ;;  %s3147_s18 = inlined_call_operand.vmem [shape: f32[1,512], index: 18, kind: input, shape index: {}]   ;;  %s3148_s19 = inlined_call_operand.vmem [shape: f32[2,16,512], index: 19, kind: output, shape index: {}]  }
   0x1   :  { %3156 = sst [smem:[#allocation9_spill]] %s3129_s0  ;;  %s2651_s0 = smov 0  }
   0x2   :  { %3157 = sst [smem:[#allocation10_spill]] %s3130_s1  ;;  %s2657_s21 = smov 0  }
   0x3   :  { %3158 = sst [smem:[#allocation11_spill]] %s3131_s2  ;;  %s2659_s1 = smov 0  }
   0x4   :  { %3159 = sst [smem:[#allocation12_spill]] %s3132_s3 }
   0x5   :  { %3160 = sst [smem:[#allocation13_spill]] %s3135_s6 }
   0x6   :  { %3161 = sst [smem:[#allocation14_spill]] %s3136_s7 }
   0x7   :  { %3162 = sst [smem:[#allocation15_spill]] %s3142_s13 }
   0x8   :  { %3163 = sst [smem:[#allocation16_spill]] %s3144_s15 }
   0x9   :  { %3164 = sst [smem:[#allocation17_spill]] %s3145_s16 }
   0xa   :  { %3165 = sst [smem:[#allocation18_spill]] %s3146_s17 }
   0xb   :  { %3166 = sst [smem:[#allocation19_spill]] %s3147_s18 }
   0xc   :  { %3167 = sst [smem:[#allocation20_spill]] %s3148_s19 }
   0xd LB: > { %3168 = sst [smem:[#allocation3_spill]] %s2532_s0  ;;  %s38_s22 = sadd.s32 1, %s2540_s20  ;;  %s2548_s1 = sphi %s2659_s1, %s29_s1   ;;  %s2544_s21 = sphi %s2657_s21, %s3198_s21   ;;  %s2540_s20 = sphi %s2655_s20, %s3197_s20   ;;  %s2536_s30 = sphi %s2653_s30, %s3196_s30   ;;  %s2532_s0 = sphi %s2651_s0, %s3195_s0  }
   0xe   : > { %3169 = sst [smem:[#allocation4_spill]] %s2540_s20  ;;  %s41_s2 = sadd.s32 1, %s2544_s21 }
   0xf   : > { %3170 = sst [smem:[#allocation5_spill]] %s2544_s21  ;;  %p39_p0 = scmp.ge.s32.totalorder %s38_s22, 2 }
  0x10   : > { %3171 = sst [smem:[#allocation6_spill]] %s2548_s1  ;;  %p2260_p1 = scmp.ge.s32.totalorder %s2548_s1, 1 }
  0x11   : > { %p645_p2 = scmp.lt.s32.totalorder %s2548_s1, 5  ;;  %s3200_s22 = smov (%p39_p0, %s38_s22), 0 }
  0x12   : > { %3172 = sst [smem:[#allocation7_spill]] %s3200_s22  ;;  %s3202_s2 = smov (!%p39_p0, %s41_s2), %s2544_s21 }
  0x13   : > { %p646_p3 = pnand %p2260_p1, %p645_p2  ;;  %p43_p4 = scmp.ge.s32.totalorder %s3202_s2, 2 }
  0x14   : > { %p742_p5 = scmp.lt.s32.totalorder (!%p646_p3), %s2536_s30, 1  ;;  %p747_p6 = scmp.lt.s32.totalorder (!%p646_p3), %s2532_s0, 1 }
  0x15   : > { %s3204_s2 = smov (%p43_p4, %s3202_s2), 0  ;;  %649 = sbr.rel (%p646_p3) target bundleno = 3679 (0xe5f), region = 96 }
  0x16   : > { %3173 = sst [smem:[#allocation8_spill]] %s3204_s2 }
  0x17   : > { %s3174_s27 = sld [smem:[#allocation9_spill]] (!%p646_p3) }
  0x18   : > { %s3175_s6 = sld [smem:[#allocation13_spill]] (!%p646_p3) }
  0x19   : > { %s3176_s7 = sld [smem:[#allocation14_spill]] (!%p646_p3) }
  0x1a   : > { %s3206_s30 = smov (!%p742_p5, %s2536_s30), 1  ;;  %s3177_s20 = sld [smem:[#allocation15_spill]] }
  0x1b   : > { %s2685_s23 = scalar_select %p747_p6, %s2532_s0, 1 }
  0x1c   : > { %s2393_s24 = sshll.u32 %s3206_s30, 4  ;;  %s2397_s25 = sshll.u32 %s3206_s30, 6 }
  0x1d   : > { %s746_s28 = scalar_lea.vmem %s3174_s27, %s2393_s24  ;;  %s2408_s18 = smul.u32 384, %s2685_s23 }
  0x1e   : > { %s2394_s16 = sshll.u32 %s2685_s23, 5  ;;  %s2396_s24 = sshll.u32 %s2685_s23, 6 }
  0x1f   : > { %s2707_s13 = scalar_lea.vmem %s3175_s6, %s2408_s18  ;;  %s2712_s2 = scalar_lea.vmem %s3176_s7, %s2394_s16 }
  0x20   : > { %s2725_s0 = scalar_lea.vmem %s3140_s11, %s2394_s16  ;;  %s787_s6 = scalar_lea.vmem %s3143_s14, %s2685_s23 }
  0x21   : > { %s2739_s7 = scalar_lea.vmem %s3177_s20, %s2396_s24  ;;  %s3178_s1 = sld [smem:[#allocation20_spill]] }
  0x22   : > { %s3179_s16 = sld [smem:[#allocation3_spill]] }
  0x27   : > { %s2744_s15 = scalar_lea.vmem %s3178_s1, %s2397_s25 }
  0x28   : > { %p2272_p7 = scmp.ne.s32.totalorder %s3179_s16, 0 }
  0x29   : > { %s3180_s19 = sld [smem:[#allocation10_spill]] (!%p2272_p7) }
  0x2a   : > { %796 = sbr.rel (%p2272_p7) target bundleno = 183 (0xb7), region = 100  ;;  %s3181_s20 = sld [smem:[#allocation11_spill]] (!%p2272_p7) }
  0x2b   : > { %s3182_s26 = sld [smem:[#allocation12_spill]] (!%p2272_p7) }
  0x2f   : > { %v800_v0 = vld [vmem:[%s3180_s19 + $0x8] sm:$0xff]  ;;  %v799_v1 = vld [vmem:[%s3180_s19] sm:$0xff]  ;;  %vm805_vm0 = vcmask 130048   ;;  %vm839_vm1 = vcmask 261120  }
  0x30   : > { %826 = vmatpush.msra.mxu0 %v800_v0  ;;  %2398 = vmatpush.msra.mxu1 %v800_v0  ;;  %v797_v2 = vld [vmem:[%s746_s28] sm:$0xff]  ;;  %v798_v3 = vld [vmem:[%s746_s28 + $0x8] sm:$0xff] }
  0x31   : > { %v2450_v4 = vld [vmem:[%s3181_s20] ss:$0 sm:$0xff]  ;;  %v836_v8 = vld [vmem:[%s3182_s26 + $0x8] sm:$0xff] }
  0x32   : > { %827 = vmatpush.msra.mxu0 %v799_v1  ;;  %2399 = vmatpush.msra.mxu1 %v799_v1  ;;  %v835_v6 = vld [vmem:[%s3182_s26] sm:$0xff] }
  0x33   : > { %2273 = vmatmul.msk.f32.vlgmr.msra.gmra.mxu0 %vm805_vm0, %v797_v2  ;;  %2274 = vmatmul.msk.f32.vlgmr.msra.gmra.mxu1 %vm805_vm0, %v798_v3 }
  0xb0   : > { %v829_v5 = vpop.f32.mrf.mxu0  ;;  %v832_v7 = vpop.f32.mrf.mxu1 }
  0xb1   : > { %v830_v9 = vadd.f32 %v2450_v4, %v829_v5  ;;  %v833_v10 = vadd.f32 %v2450_v4, %v832_v7 }
  0xb3   : > { %v837_v11 = vadd.f32 %v835_v6, %v830_v9  ;;  %v838_v12 = vadd.f32 %v836_v8, %v833_v10 }
  0xb5   : > { %840 = vst.msk [vmem:[#allocation2] sm:$0xff] %vm839_vm1, %v837_v11 }
  0xb6   : > { %841 = vst.msk [vmem:[#allocation2 + $0x8] sm:$0xff] %vm839_vm1, %v838_v12 }
  0xb7 PF: > { %vm846_vm2 = vcmask 261120   ;;  %v2550_v17 = vmov 32.0   ;;  %v911_v34 = vld [vmem:[%s2707_s13 + $0x18] sm:$0xff]  ;;  %v910_v36 = vld [vmem:[%s2707_s13 + $0x10] sm:$0xff]  ;;  %v909_v38 = vld [vmem:[%s2707_s13 + $0x8] sm:$0xff]  ;;  %s3183_s29 = scalar_lea.vmem %s3133_s4, %s2685_s23  ;;  %s3184_s18 = scalar_lea.vmem %s3134_s5, %s2685_s23  ;;  %vm997_vm10 = vcmask 64512  }
  0xb8   : > { %2458 = vrcp.f32 %v2550_v17  ;;  %v2280_v35 = vld [vmem:[%s2707_s13 + $0x98] sm:$0xff]  ;;  %2400 = vmatpush.msra.mxu2 %v911_v34  ;;  %v2279_v37 = vld [vmem:[%s2707_s13 + $0x90] sm:$0xff]  ;;  %930 = vmatpush.msra.mxu0 %v911_v34  ;;  %v2278_v39 = vld [vmem:[%s2707_s13 + $0x88] sm:$0xff]  ;;  %vm1035_vm11 = vcmask 130048   ;;  %s3185_s22 = scalar_lea.vmem %s3137_s8, %s2685_s23  ;;  %s3186_s25 = scalar_lea.vmem %s3138_s9, %s2685_s23 }
  0xb9   : > { %2404 = vmatpush.msra.mxu3 %v2280_v35  ;;  %958 = vmatpush.msra.mxu1 %v2280_v35  ;;  %v908_v40 = vld [vmem:[%s2707_s13] sm:$0xff]  ;;  %v2286_v42 = vld [vmem:[%s2707_s13 + $0x118] sm:$0xff]  ;;  %v2285_v43 = vld [vmem:[%s2707_s13 + $0x110] sm:$0xff]  ;;  %s3187_s3 = scalar_lea.vmem %s3139_s10, %s2685_s23  ;;  %s3188_s28 = scalar_lea.vmem %s3141_s12, %s2685_s23 }
  0xba   : > { %2401 = vmatpush.msra.mxu2 %v910_v36  ;;  %931 = vmatpush.msra.mxu0 %v910_v36  ;;  %v2277_v41 = vld [vmem:[%s2707_s13 + $0x80] sm:$0xff]  ;;  %v2284_v46 = vld [vmem:[%s2707_s13 + $0x108] sm:$0xff]  ;;  %v2298_v49 = vld [vmem:[%s2707_s13 + $0x38] sm:$0xff] }
  0xbb   : > { %2405 = vmatpush.msra.mxu3 %v2279_v37  ;;  %959 = vmatpush.msra.mxu1 %v2279_v37  ;;  %v2283_v48 = vld [vmem:[%s2707_s13 + $0x100] sm:$0xff]  ;;  %v2297_v50 = vld [vmem:[%s2707_s13 + $0x30] sm:$0xff]  ;;  %v2296_v52 = vld [vmem:[%s2707_s13 + $0x28] sm:$0xff] }
  0xbc   : > { %v2766_v15 = vld [vmem:[#allocation2] sm:$0xff]  ;;  %2402 = vmatpush.msra.mxu2 %v909_v38  ;;  %932 = vmatpush.msra.mxu0 %v909_v38  ;;  %v2304_v9 = vld [vmem:[%s2707_s13 + $0xb8] sm:$0xff]  ;;  %v2303_v11 = vld [vmem:[%s2707_s13 + $0xb0] sm:$0xff] }
  0xbd   : > { %v2762_v13 = vld [vmem:[#allocation2 + $0x8] sm:$0xff]  ;;  %v847_v16 = vsel %vm846_vm2, %v2766_v15, 0.0  ;;  %2406 = vmatpush.msra.mxu3 %v2278_v39  ;;  %960 = vmatpush.msra.mxu1 %v2278_v39  ;;  %v2295_v54 = vld [vmem:[%s2707_s13 + $0x20] sm:$0xff] }
  0xbe   : > { %v850_v14 = vsel %vm846_vm2, %v2762_v13, 0.0  ;;  %v2459_v18 = vpop.eup %2458  ;;  %2403 = vmatpush.msra.mxu2 %v908_v40  ;;  %933 = vmatpush.msra.mxu0 %v908_v40  ;;  %v2451_v0 = vld [vmem:[%s3183_s29] ss:$0 sm:$0xff] }
  0xbf   : > { %851 = vadd.xlane.f32.xlu0 %v850_v14  ;;  %v854_v19 = vmul.f32 32.0, %v2459_v18  ;;  %vm858_vm3 = vweird.f32 %v2459_v18  ;;  %2407 = vmatpush.msra.mxu3 %v2277_v41  ;;  %v2452_v3 = vld [vmem:[%s3184_s18] ss:$0 sm:$0xff] }
  0xc0   : > { %961 = vmatpush.msra.mxu1 %v2277_v41  ;;  %986 = vmatpush.msrb.mxu2 %v2286_v42 }
  0xc1   : > { %v855_v20 = vsub.f32 1.0, %v854_v19 }
  0xc2   : > { %987 = vmatpush.msrb.mxu2 %v2285_v43  ;;  %1105 = vmatpush.msrb.mxu1 %v2298_v49 }
  0xc3   : > { %v856_v21 = vmul.f32 %v2459_v18, %v855_v20 }
  0xc4   : > { %988 = vmatpush.msrb.mxu2 %v2284_v46  ;;  %1106 = vmatpush.msrb.mxu1 %v2297_v50 }
  0xc5   : > { %v857_v22 = vadd.f32 %v2459_v18, %v856_v21 }
  0xc6   : > { %989 = vmatpush.msrb.mxu2 %v2283_v48  ;;  %1107 = vmatpush.msrb.mxu1 %v2296_v52 }
  0xc7   : > { %848 = vadd.xlane.f32.xlu0 %v847_v16  ;;  %v2770_v23 = vsel %vm858_vm3, %v2459_v18, %v857_v22  ;;  %v2302_v16 = vld [vmem:[%s2707_s13 + $0xa8] sm:$0xff]  ;;  %v2301_v18 = vld [vmem:[%s2707_s13 + $0xa0] sm:$0xff]  ;;  %v2310_v22 = vld [vmem:[%s2707_s13 + $0x138] sm:$0xff]  ;;  %vm1845_vm3 = vcmask 523264  }
  0xc8   : > { %1108 = vmatpush.msrb.mxu1 %v2295_v54 }
 0x132   : > { %v852_v24 = vpop.xlane.xlu0 %851 }
 0x133   : > { %v861_v25 = vmul.f32 %v2770_v23, %v852_v24 }
 0x135   : > { %v2774_v26 = vsub.f32 %v2762_v13, %v861_v25  ;;  %v2309_v25 = vld [vmem:[%s2707_s13 + $0x130] sm:$0xff] }
 0x137   : > { %v865_v27 = vmul.f32 %v2774_v26, %v2774_v26 }
 0x139   : > { %v869_v28 = vsel %vm846_vm2, %v865_v27, 0.0  ;;  %v2308_v27 = vld [vmem:[%s2707_s13 + $0x128] sm:$0xff] }
 0x13a   : > { %870 = vadd.xlane.f32.xlu1 %v869_v28  ;;  %v849_v29 = vpop.xlane.xlu0 %848 }
 0x13b   : > { %v860_v30 = vmul.f32 %v2770_v23, %v849_v29  ;;  %v2307_v29 = vld [vmem:[%s2707_s13 + $0x120] sm:$0xff] }
 0x13d   : > { %v2781_v31 = vsub.f32 %v2766_v15, %v860_v30 }
 0x13f   : > { %v864_v32 = vmul.f32 %v2781_v31, %v2781_v31 }
 0x141   : > { %v866_v33 = vsel %vm846_vm2, %v864_v32, 0.0 }
 0x142   : > { %867 = vadd.xlane.f32.xlu1 %v866_v33 }
 0x1ad   : > { %v871_v44 = vpop.xlane.xlu1 %870 }
 0x1ae   : > { %v873_v45 = vmul.f32 %v871_v44, %v2770_v23 }
 0x1b0   : > { %v875_v47 = vadd.f32 1e-05, %v873_v45 }
 0x1b2   : > { %2460 = vrsqrt.f32 %v875_v47  ;;  %vm892_vm5 = vweird.f32 %v875_v47 }
 0x1b5   : > { %v868_v51 = vpop.xlane.xlu1 %867 }
 0x1b6   : > { %v872_v53 = vmul.f32 %v868_v51, %v2770_v23 }
 0x1b8   : > { %v2461_v55 = vpop.eup %2460  ;;  %v874_v56 = vadd.f32 1e-05, %v872_v53 }
 0x1b9   : > { %v887_v57 = vmul.f32 %v2461_v55, %v875_v47  ;;  %vm893_vm4 = vweird.f32 %v2461_v55 }
 0x1ba   : > { %2462 = vrsqrt.f32 %v874_v56  ;;  %vm894_vm6 = vmor %vm892_vm5, %vm893_vm4  ;;  %vm882_vm8 = vweird.f32 %v874_v56 }
 0x1bb   : > { %v888_v58 = vmul.f32 %v2461_v55, %v887_v57  ;;  %v2325_v57 = vld [vmem:[%s2707_s13 + $0x48] sm:$0xff] }
 0x1bd   : > { %v889_v59 = vmul.f32 0.5, %v888_v58  ;;  %v2324_v58 = vld [vmem:[%s2707_s13 + $0x40] sm:$0xff] }
 0x1bf   : > { %v890_v60 = vsub.f32 1.5, %v889_v59 }
 0x1c0   : > { %v2463_v61 = vpop.eup %2462 }
 0x1c1   : > { %v891_v62 = vmul.f32 %v2461_v55, %v890_v60  ;;  %v877_v63 = vmul.f32 %v2463_v61, %v874_v56  ;;  %vm883_vm7 = vweird.f32 %v2463_v61  ;;  %v2326_v56 = vld [vmem:[%s2707_s13 + $0x50] sm:$0xff] }
 0x1c2   : > { %vm884_vm9 = vmor %vm882_vm8, %vm883_vm7 }
 0x1c3   : > { %v895_v1 = vsel %vm894_vm6, %v2461_v55, %v891_v62  ;;  %v878_v2 = vmul.f32 %v2463_v61, %v877_v63  ;;  %v2327_v55 = vld [vmem:[%s2707_s13 + $0x58] sm:$0xff]  ;;  %v1087_v63 = vld [vmem:[%s2712_s2] sm:$0xff] }
 0x1c4   : > { %v897_v4 = vmul.f32 %v895_v1, %v2774_v26 }
 0x1c5   : > { %v879_v5 = vmul.f32 0.5, %v878_v2 }
 0x1c6   : > { %v902_v6 = vmul.f32 %v2451_v0, %v897_v4 }
 0x1c7   : > { %v880_v7 = vsub.f32 1.5, %v879_v5 }
 0x1c8   : > { %v2815_v8 = vadd.f32 %v2452_v3, %v902_v6 }
 0x1c9   : > { %v881_v10 = vmul.f32 %v2463_v61, %v880_v7 }
 0x1ca   : > { %2276 = vmatmul.msk.f32.vlgmr.msra.gmra.mxu2 %vm846_vm2, %v2815_v8  ;;  %2282 = vmatmul.msk.f32.vlgmr.msra.gmra.mxu3 %vm846_vm2, %v2815_v8 }
 0x1cb   : > { %v885_v12 = vsel %vm884_vm9, %v2463_v61, %v881_v10  ;;  %1133 = vmatpush.msra.mxu2 %v2304_v9 }
 0x1cc   : > { %v896_v14 = vmul.f32 %v885_v12, %v2781_v31 }
 0x1cd   : > { %1134 = vmatpush.msra.mxu2 %v2303_v11 }
 0x1ce   : > { %v901_v17 = vmul.f32 %v2451_v0, %v896_v14 }
 0x1cf   : > { %1135 = vmatpush.msra.mxu2 %v2302_v16 }
 0x1d0   : > { %v2826_v19 = vadd.f32 %v2452_v3, %v901_v17 }
 0x1d1   : > { %1136 = vmatpush.msra.mxu2 %v2301_v18 }
 0x1d2   : > { %2275 = vmatmul.msk.f32.vlgmr.msra.gmra.mxu0 %vm846_vm2, %v2826_v19  ;;  %2281 = vmatmul.msk.f32.vlgmr.msra.gmra.mxu1 %vm846_vm2, %v2826_v19 }
 0x1d3   : > { %2287 = vmatmul.msk.f32.vlgmr.msrb.gmra.mxu2 %vm846_vm2, %v2826_v19 }
 0x1da   : > { %2299 = vmatmul.msk.f32.vlgmr.msrb.gmra.mxu1 %vm846_vm2, %v2826_v19 }
 0x1db   : > { %2288 = vmatmul.msk.f32.gmra.mxu2 %vm846_vm2, %v2815_v8 }
 0x1e2   : > { %2300 = vmatmul.msk.f32.gmra.mxu1 %vm846_vm2, %v2815_v8 }
 0x1e3   : > { %2305 = vmatmul.msk.f32.vlgmr.msra.gmra.mxu2 %vm846_vm2, %v2826_v19 }
 0x1eb   : > { %2306 = vmatmul.msk.f32.gmra.mxu2 %vm846_vm2, %v2815_v8 }
 0x24d   : > { %v938_v20 = vpop.f32.mrf.mxu2  ;;  %v966_v21 = vpop.f32.mrf.mxu3 }
 0x24e   : > { %2289 = vmatpush.xpose.msk.msrb.mxu3 %vm997_vm10, %v966_v21 }
 0x24f   : > { %v963_v24 = vpop.f32.mrf.mxu1  ;;  %v935_v26 = vpop.f32.mrf.mxu0 }
 0x252   : > { %2290 = vmatpush.xpose.msk.msrb.mxu3 %vm997_vm10, %v963_v24  ;;  %v2332_v24 = vld [vmem:[%s2707_s13 + $0xd0] sm:$0xff] }
 0x255   : > { %2291 = vmatmul.msk.f32.vlgmr.msrb.gmra.mxu3 %vm997_vm10, %v935_v26  ;;  %v2330_v26 = vld [vmem:[%s2707_s13 + $0xc0] sm:$0xff] }
 0x256   : > { %1161 = vmatpush.msra.mxu3 %v2310_v22  ;;  %v991_v28 = vpop.f32.mrf.mxu2  ;;  %v2333_v22 = vld [vmem:[%s2707_s13 + $0xd8] sm:$0xff] }
 0x257   : > { %v1110_v61 = vpop.f32.mrf.mxu1 }
 0x258   : > { %1162 = vmatpush.msra.mxu3 %v2309_v25  ;;  %v2331_v25 = vld [vmem:[%s2707_s13 + $0xc8] sm:$0xff] }
 0x25a   : > { %1163 = vmatpush.msra.mxu3 %v2308_v27 }
 0x25c   : > { %1164 = vmatpush.msra.mxu3 %v2307_v29 }
 0x25d   : > { %2292 = vmatmul.msk.f32.gmra.mxu3 %vm997_vm10, %v938_v20 }
 0x25e   : > { %v994_v30 = vpop.f32.mrf.mxu2  ;;  %1312 = vmatpush.msrb.mxu3 %v1087_v63 }
 0x25f   : > { %1078 = vmatpush.msrb.mxu0 %v994_v30  ;;  %v1113_v62 = vpop.f32.mrf.mxu1 }
 0x261   : > { %1079 = vmatpush.msrb.mxu0 %v991_v28 }
 0x265   : > { %2311 = vmatmul.msk.f32.vlgmr.msra.gmra.mxu3 %vm846_vm2, %v2826_v19 }
 0x266   : > { %v1138_v31 = vpop.f32.mrf.mxu2 }
 0x26d   : > { %2312 = vmatmul.msk.f32.gmra.mxu3 %vm846_vm2, %v2815_v8 }
 0x26e   : > { %v1141_v32 = vpop.f32.mrf.mxu2 }
 0x26f   : > { %2313 = vmatpush.xpose.msk.msra.mxu0 %vm997_vm10, %v1141_v32 }
 0x273   : > { %2314 = vmatpush.xpose.msk.msra.mxu0 %vm997_vm10, %v1138_v31 }
 0x2d8   : > { %v1027_v33 = vpop.f32.mrf.mxu3 }
 0x2d9   : > { %v1033_v34 = vmul.f32 0.35355338, %v1027_v33  ;;  %v2319_v33 = vld [vmem:[%s2712_s2 + $0x8] sm:$0xff] }
 0x2da   : > { %1283 = vmatpush.msrb.mxu2 %v2319_v33 }
 0x2db   : > { %v1036_v35 = vsel %vm1035_vm11, %v1033_v34, -inf }
 0x2dc   : > { %1037 = vmax.xlane.f32.xlu2 %v1036_v35  ;;  %v2338_v35 = vld [vmem:[%s2707_s13 + $0x150] sm:$0xff] }
 0x2e0   : > { %v1030_v36 = vpop.f32.mrf.mxu3 }
 0x2e1   : > { %v1034_v37 = vmul.f32 0.35355338, %v1030_v36  ;;  %v2337_v36 = vld [vmem:[%s2707_s13 + $0x148] sm:$0xff] }
 0x2e3   : > { %v1039_v38 = vsel %vm1035_vm11, %v1034_v37, -inf }
 0x2e4   : > { %1040 = vmax.xlane.f32.xlu2 %v1039_v38  ;;  %v2354_v38 = vld [vmem:[%s2707_s13 + $0x78] sm:$0xff] }
 0x2e8   : > { %v1166_v39 = vpop.f32.mrf.mxu3 }
 0x2f0   : > { %v1169_v40 = vpop.f32.mrf.mxu3 }
 0x2f1   : > { %1251 = vmatpush.msra.mxu1 %v1169_v40  ;;  %v2353_v40 = vld [vmem:[%s2707_s13 + $0x70] sm:$0xff] }
 0x2f3   : > { %1252 = vmatpush.msra.mxu1 %v1166_v39 }
 0x2f5   : > { %1365 = vmatpush.msrb.mxu1 %v2333_v22 }
 0x2f7   : > { %1366 = vmatpush.msrb.mxu1 %v2332_v24 }
 0x2f9   : > { %1367 = vmatpush.msrb.mxu1 %v2331_v25 }
 0x2fb   : > { %1368 = vmatpush.msrb.mxu1 %v2330_v26 }
 0x34f   : > { %v1038_v41 = vpop.xlane.xlu2 %1037 }
 0x350   : > { %v1042_v42 = vsub.f32 %v1033_v34, %v1038_v41  ;;  %v2339_v34 = vld [vmem:[%s2707_s13 + $0x158] sm:$0xff]  ;;  %v2352_v41 = vld [vmem:[%s2707_s13 + $0x68] sm:$0xff] }
 0x351   : > { %1393 = vmatpush.msra.mxu2 %v2339_v34 }
 0x352   : > { %v1044_v43 = vmul.f32 1.442695, %v1042_v42  ;;  %v2351_v42 = vld [vmem:[%s2707_s13 + $0x60] sm:$0xff] }
 0x353   : > { %1394 = vmatpush.msra.mxu2 %v2338_v35 }
 0x354   : > { %2464 = vpow2.f32 %v1044_v43 }
 0x355   : > { %1395 = vmatpush.msra.mxu2 %v2337_v36 }
 0x357   : > { %v1041_v44 = vpop.xlane.xlu2 %1040 }
 0x358   : > { %v1043_v45 = vsub.f32 %v1034_v37, %v1041_v44  ;;  %v2336_v37 = vld [vmem:[%s2707_s13 + $0x140] sm:$0xff] }
 0x359   : > { %1396 = vmatpush.msra.mxu2 %v2336_v37 }
 0x35a   : > { %v2465_v46 = vpop.eup %2464  ;;  %v1046_v47 = vmul.f32 1.442695, %v1043_v45 }
 0x35b   : > { %v1048_v48 = vsel %vm1035_vm11, %v2465_v46, 0.0 }
 0x35c   : > { %2466 = vpow2.f32 %v1046_v47  ;;  %1049 = vadd.xlane.f32.xlu0 %v1048_v48  ;;  %v2359_v48 = vld [vmem:[%s2707_s13 + $0xf0] sm:$0xff] }
 0x362   : > { %v2467_v49 = vpop.eup %2466 }
 0x363   : > { %v1051_v50 = vsel %vm1035_vm11, %v2467_v49, 0.0 }
 0x364   : > { %1052 = vadd.xlane.f32.xlu1 %v1051_v50  ;;  %v2357_v50 = vld [vmem:[%s2707_s13 + $0xe0] sm:$0xff] }
 0x3cf   : > { %v1050_v51 = vpop.xlane.xlu0 %1049 }
 0x3d0   : > { %2468 = vrcp.f32 %v1050_v51 }
 0x3d6   : > { %v2469_v52 = vpop.eup %2468 }
 0x3d7   : > { %v1053_v53 = vpop.xlane.xlu1 %1052  ;;  %v1056_v54 = vmul.f32 %v2469_v52, %v2465_v46  ;;  %v2360_v46 = vld [vmem:[%s2707_s13 + $0xf8] sm:$0xff] }
 0x3d8   : > { %2470 = vrcp.f32 %v1053_v53 }
 0x3d9   : > { %2293 = vmatmul.msk.f32.vlgmr.msrb.gmra.mxu0 %vm1035_vm11, %v1056_v54 }
 0x3da   : > { %1337 = vmatpush.msrb.mxu0 %v2327_v55 }
 0x3dc   : > { %1338 = vmatpush.msrb.mxu0 %v2326_v56 }
 0x3de   : > { %v2471_v59 = vpop.eup %2470  ;;  %1339 = vmatpush.msrb.mxu0 %v2325_v57  ;;  %v2348_v57 = vld [vmem:[%s2712_s2 + $0x10] sm:$0xff] }
 0x3df   : > { %v1057_v60 = vmul.f32 %v2471_v59, %v2467_v49  ;;  %v2358_v49 = vld [vmem:[%s2707_s13 + $0xe8] sm:$0xff] }
 0x3e0   : > { %1340 = vmatpush.msrb.mxu0 %v2324_v58 }
 0x3e1   : > { %2294 = vmatmul.msk.f32.gmra.mxu0 %vm1035_vm11, %v1057_v60 }
 0x3e9   : > { %2315 = vmatmul.msk.f32.vlgmr.msra.gmra.mxu0 %vm997_vm10, %v1110_v61 }
 0x3f1   : > { %2316 = vmatmul.msk.f32.gmra.mxu0 %vm997_vm10, %v1113_v62 }
 0x3f9   : > { %2328 = vmatmul.msk.f32.vlgmr.msrb.gmra.mxu0 %vm846_vm2, %v2826_v19 }
 0x401   : > { %2329 = vmatmul.msk.f32.gmra.mxu0 %vm846_vm2, %v2815_v8 }
 0x456   : > { %v1081_v0 = vpop.f32.mrf.mxu0 }
 0x457   : > { %2322 = vmatmul.msk.f32.vlgmr.msrb.gmra.mxu3 %vm997_vm10, %v1081_v0 }
 0x45e   : > { %v1084_v1 = vpop.f32.mrf.mxu0 }
 0x45f   : > { %2323 = vmatmul.msk.f32.gmra.mxu3 %vm997_vm10, %v1084_v1 }
 0x466   : > { %v1201_v2 = vpop.f32.mrf.mxu0 }
 0x467   : > { %v1207_v3 = vmul.f32 0.35355338, %v1201_v2 }
 0x469   : > { %v1209_v4 = vsel %vm1035_vm11, %v1207_v3, -inf }
 0x46a   : > { %1210 = vmax.xlane.f32.xlu2 %v1209_v4 }
 0x46e   : > { %v1204_v5 = vpop.f32.mrf.mxu0 }
 0x46f   : > { %v1208_v6 = vmul.f32 0.35355338, %v1204_v5 }
 0x471   : > { %v1212_v7 = vsel %vm1035_vm11, %v1208_v6, -inf }
 0x472   : > { %1213 = vmax.xlane.f32.xlu0 %v1212_v7 }
 0x476   : > { %v1342_v47 = vpop.f32.mrf.mxu0 }
 0x47e   : > { %v1345_v51 = vpop.f32.mrf.mxu0 }
 0x4da   : > { %v2922_v52 = vpop.f32.mrf.mxu3 }
 0x4dd   : > { %v1211_v9 = vpop.xlane.xlu2 %1210 }
 0x4de   : > { %v1215_v10 = vsub.f32 %v1207_v3, %v1211_v9 }
 0x4e0   : > { %v1217_v11 = vmul.f32 1.442695, %v1215_v10 }
 0x4e2   : > { %2472 = vpow2.f32 %v1217_v11  ;;  %v1317_v54 = vpop.f32.mrf.mxu3 }
 0x4e5   : > { %v1214_v12 = vpop.xlane.xlu0 %1213 }
 0x4e6   : > { %v1216_v14 = vsub.f32 %v1208_v6, %v1214_v12 }
 0x4e8   : > { %v2473_v16 = vpop.eup %2472  ;;  %v1219_v17 = vmul.f32 1.442695, %v1216_v14 }
 0x4e9   : > { %v1221_v18 = vsel %vm1035_vm11, %v2473_v16, 0.0 }
 0x4ea   : > { %2474 = vpow2.f32 %v1219_v17  ;;  %1222 = vadd.xlane.f32.xlu1 %v1221_v18  ;;  %v2366_v17 = vld [vmem:[%s2707_s13 + $0x178] sm:$0xff]  ;;  %v2365_v18 = vld [vmem:[%s2707_s13 + $0x170] sm:$0xff] }
 0x4f0   : > { %v2475_v20 = vpop.eup %2474 }
 0x4f1   : > { %v1224_v21 = vsel %vm1035_vm11, %v2475_v20, 0.0 }
 0x4f2   : > { %1225 = vadd.xlane.f32.xlu2 %v1224_v21  ;;  %v2363_v21 = vld [vmem:[%s2707_s13 + $0x160] sm:$0xff] }
 0x55d   : > { %v1223_v27 = vpop.xlane.xlu1 %1222 }
 0x55e   : > { %2476 = vrcp.f32 %v1223_v27 }
 0x564   : > { %v2477_v28 = vpop.eup %2476 }
 0x565   : > { %v1229_v29 = vmul.f32 %v2477_v28, %v2473_v16  ;;  %v1226_v30 = vpop.xlane.xlu2 %1225 }
 0x566   : > { %2478 = vrcp.f32 %v1226_v30 }
 0x567   : > { %2317 = vmatmul.msk.f32.vlgmr.msra.gmra.mxu1 %vm1035_vm11, %v1229_v29 }
 0x568   : > { %1515 = vmatpush.msra.mxu1 %v2348_v57 }
 0x56c   : > { %v2479_v31 = vpop.eup %2478 }
 0x56d   : > { %v1230_v32 = vmul.f32 %v2479_v31, %v2475_v20  ;;  %v2364_v20 = vld [vmem:[%s2707_s13 + $0x168] sm:$0xff] }
 0x56f   : > { %2318 = vmatmul.msk.f32.gmra.mxu1 %vm1035_vm11, %v1230_v32 }
 0x577   : > { %2334 = vmatmul.msk.f32.vlgmr.msrb.gmra.mxu1 %vm846_vm2, %v2826_v19 }
 0x57f   : > { %2335 = vmatmul.msk.f32.gmra.mxu1 %vm846_vm2, %v2815_v8 }
 0x5e4   : > { %v1254_v39 = vpop.f32.mrf.mxu1 }
 0x5e5   : > { %2320 = vmatmul.msk.f32.vlgmr.msrb.gmra.mxu2 %vm997_vm10, %v1254_v39 }
 0x5e6   : > { %1542 = vmatpush.msrb.mxu2 %v2354_v38 }
 0x5e8   : > { %1543 = vmatpush.msrb.mxu2 %v2353_v40 }
 0x5ea   : > { %1544 = vmatpush.msrb.mxu2 %v2352_v41 }
 0x5ec   : > { %v1257_v43 = vpop.f32.mrf.mxu1  ;;  %1545 = vmatpush.msrb.mxu2 %v2351_v42 }
 0x5ed   : > { %2321 = vmatmul.msk.f32.gmra.mxu2 %vm997_vm10, %v1257_v43 }
 0x5f4   : > { %v1370_v44 = vpop.f32.mrf.mxu1 }
 0x5f5   : > { %2340 = vmatmul.msk.f32.vlgmr.msra.gmra.mxu2 %vm846_vm2, %v2826_v19 }
 0x5fc   : > { %v1373_v45 = vpop.f32.mrf.mxu1 }
 0x5fd   : > { %2341 = vmatmul.msk.f32.gmra.mxu2 %vm846_vm2, %v2815_v8  ;;  %2342 = vmatpush.xpose.msk.msra.mxu3 %vm997_vm10, %v1373_v45 }
 0x601   : > { %2343 = vmatpush.xpose.msk.msra.mxu3 %vm997_vm10, %v1370_v44 }
 0x604   : > { %2344 = vmatmul.msk.f32.vlgmr.msra.gmra.mxu3 %vm997_vm10, %v1342_v47 }
 0x605   : > { %1570 = vmatpush.msrb.mxu3 %v2360_v46  ;;  %2355 = vmatmul.msk.f32.vlgmr.msrb.gmra.mxu2 %vm846_vm2, %v2826_v19 }
 0x607   : > { %1571 = vmatpush.msrb.mxu3 %v2359_v48 }
 0x609   : > { %1572 = vmatpush.msrb.mxu3 %v2358_v49 }
 0x60b   : > { %1573 = vmatpush.msrb.mxu3 %v2357_v50 }
 0x60c   : > { %2345 = vmatmul.msk.f32.gmra.mxu3 %vm997_vm10, %v1345_v51 }
 0x60d   : > { %2356 = vmatmul.msk.f32.gmra.mxu2 %vm846_vm2, %v2815_v8 }
 0x614   : > { %2361 = vmatmul.msk.f32.vlgmr.msrb.gmra.mxu3 %vm846_vm2, %v2826_v19 }
 0x61c   : > { %2362 = vmatmul.msk.f32.gmra.mxu3 %vm846_vm2, %v2815_v8 }
 0x668   : > { %v2924_v53 = vpop.f32.mrf.mxu2 }
 0x670   : > { %v1288_v55 = vpop.f32.mrf.mxu2 }
 0x671   : > { %v2926_v56 = vadd.f32 %v1317_v54, %v1288_v55  ;;  %v2375_v54 = vld [vmem:[%s2712_s2 + $0x18] sm:$0xff] }
 0x672   : > { %1720 = vmatpush.msra.mxu3 %v2375_v54 }
 0x678   : > { %v1398_v58 = vpop.f32.mrf.mxu2 }
 0x680   : > { %v1401_v59 = vpop.f32.mrf.mxu2 }
 0x681   : > { %1483 = vmatpush.msra.mxu0 %v1401_v59 }
 0x683   : > { %1484 = vmatpush.msra.mxu0 %v1398_v58 }
 0x685   : > { %1598 = vmatpush.msrb.mxu0 %v2366_v17 }
 0x687   : > { %v1433_v60 = vpop.f32.mrf.mxu3  ;;  %1599 = vmatpush.msrb.mxu0 %v2365_v18 }
 0x688   : > { %v1439_v61 = vmul.f32 0.35355338, %v1433_v60  ;;  %v1547_v31 = vpop.f32.mrf.mxu2 }
 0x689   : > { %1600 = vmatpush.msrb.mxu0 %v2364_v20 }
 0x68a   : > { %v1441_v62 = vsel %vm1035_vm11, %v1439_v61, -inf }
 0x68b   : > { %1442 = vmax.xlane.f32.xlu0 %v1441_v62  ;;  %1601 = vmatpush.msrb.mxu0 %v2363_v21 }
 0x68f   : > { %v1436_v63 = vpop.f32.mrf.mxu3 }
 0x690   : > { %v1440_v0 = vmul.f32 0.35355338, %v1436_v63  ;;  %v1550_v33 = vpop.f32.mrf.mxu2 }
 0x692   : > { %v1444_v1 = vsel %vm1035_vm11, %v1440_v0, -inf }
 0x693   : > { %1445 = vmax.xlane.f32.xlu1 %v1444_v1  ;;  %v2453_v1 = vld [vmem:[%s3185_s22] ss:$0 sm:$0xff] }
 0x697   : > { %v1575_v2 = vpop.f32.mrf.mxu3 }
 0x69f   : > { %v1578_v3 = vpop.f32.mrf.mxu3 }
 0x6a0   : > { %2369 = vmatpush.xpose.msk.msrb.mxu1 %vm997_vm10, %v1578_v3 }
 0x6a4   : > { %2370 = vmatpush.xpose.msk.msrb.mxu1 %vm997_vm10, %v1575_v2 }
 0x6fe   : > { %v1443_v4 = vpop.xlane.xlu0 %1442 }
 0x6ff   : > { %v1447_v5 = vsub.f32 %v1439_v61, %v1443_v4 }
 0x701   : > { %v1449_v6 = vmul.f32 1.442695, %v1447_v5 }
 0x703   : > { %2480 = vpow2.f32 %v1449_v6 }
 0x706   : > { %v1446_v7 = vpop.xlane.xlu1 %1445 }
 0x707   : > { %v1448_v9 = vsub.f32 %v1440_v0, %v1446_v7 }
 0x709   : > { %v2481_v10 = vpop.eup %2480  ;;  %v1451_v11 = vmul.f32 1.442695, %v1448_v9 }
 0x70a   : > { %v1453_v12 = vsel %vm1035_vm11, %v2481_v10, 0.0 }
 0x70b   : > { %2482 = vpow2.f32 %v1451_v11  ;;  %1454 = vadd.xlane.f32.xlu2 %v1453_v12 }
 0x711   : > { %v2483_v14 = vpop.eup %2482 }
 0x712   : > { %v1456_v16 = vsel %vm1035_vm11, %v2483_v14, 0.0 }
 0x713   : > { %1457 = vadd.xlane.f32.xlu0 %v1456_v16 }
 0x77e   : > { %v1455_v22 = vpop.xlane.xlu2 %1454 }
 0x77f   : > { %2484 = vrcp.f32 %v1455_v22  ;;  %v1797_v22 = vld [vmem:[%s2725_s0 + $0x18] sm:$0xff] }
 0x785   : > { %v2485_v24 = vpop.eup %2484 }
 0x786   : > { %v1461_v25 = vmul.f32 %v2485_v24, %v2481_v10  ;;  %v1458_v26 = vpop.xlane.xlu0 %1457  ;;  %v1796_v24 = vld [vmem:[%s2725_s0 + $0x10] sm:$0xff] }
 0x787   : > { %2486 = vrcp.f32 %v1458_v26  ;;  %v1794_v26 = vld [vmem:[%s2725_s0] sm:$0xff] }
 0x788   : > { %2346 = vmatmul.msk.f32.vlgmr.msra.gmra.mxu0 %vm1035_vm11, %v1461_v25  ;;  %v1795_v25 = vld [vmem:[%s2725_s0 + $0x8] sm:$0xff] }
 0x789   : > { %1820 = vmatpush.msra.mxu0 %v1797_v22 }
 0x78b   : > { %1821 = vmatpush.msra.mxu0 %v1796_v24 }
 0x78d   : > { %v2487_v27 = vpop.eup %2486  ;;  %1822 = vmatpush.msra.mxu0 %v1795_v25 }
 0x78e   : > { %v1462_v28 = vmul.f32 %v2487_v27, %v2483_v14 }
 0x78f   : > { %1823 = vmatpush.msra.mxu0 %v1794_v26 }
 0x790   : > { %2347 = vmatmul.msk.f32.gmra.mxu0 %vm1035_vm11, %v1462_v28 }
 0x798   : > { %2367 = vmatmul.msk.f32.vlgmr.msrb.gmra.mxu0 %vm846_vm2, %v2826_v19  ;;  %v1315_v19 = vadd.f32 %v2922_v52, %v2924_v53 }
 0x7a0   : > { %2368 = vmatmul.msk.f32.gmra.mxu0 %vm846_vm2, %v2815_v8 }
 0x805   : > { %v1486_v29 = vpop.f32.mrf.mxu0 }
 0x806   : > { %2349 = vmatmul.msk.f32.vlgmr.msra.gmra.mxu1 %vm997_vm10, %v1486_v29 }
 0x80d   : > { %v1489_v30 = vpop.f32.mrf.mxu0 }
 0x80e   : > { %2350 = vmatmul.msk.f32.gmra.mxu1 %vm997_vm10, %v1489_v30  ;;  %v1840_v30 = vld [vmem:[%s2739_s7 + $0x38] sm:$0xff] }
 0x80f   : > { %1860 = vmatpush.msra.mxu1 %v1840_v30 }
 0x815   : > { %v1603_v32 = vpop.f32.mrf.mxu0 }
 0x816   : > { %2371 = vmatmul.msk.f32.vlgmr.msrb.gmra.mxu1 %vm997_vm10, %v1547_v31  ;;  %v1839_v31 = vld [vmem:[%s2739_s7 + $0x30] sm:$0xff] }
 0x817   : > { %1861 = vmatpush.msra.mxu1 %v1839_v31 }
 0x81d   : > { %v1606_v34 = vpop.f32.mrf.mxu0 }
 0x81e   : > { %2372 = vmatmul.msk.f32.gmra.mxu1 %vm997_vm10, %v1550_v33  ;;  %1688 = vmatpush.msra.mxu2 %v1606_v34 }
 0x820   : > { %1689 = vmatpush.msra.mxu2 %v1603_v32  ;;  %v1838_v32 = vld [vmem:[%s2739_s7 + $0x28] sm:$0xff] }
 0x821   : > { %1862 = vmatpush.msra.mxu1 %v1838_v32 }
 0x883   : > { %v1517_v8 = vpop.f32.mrf.mxu1 }
 0x884   : > { %v1523_v35 = vadd.f32 %v1517_v8, %v1315_v19 }
 0x88b   : > { %v1520_v36 = vpop.f32.mrf.mxu1 }
 0x88c   : > { %v1524_v37 = vadd.f32 %v1520_v36, %v2926_v56 }
 0x893   : > { %v1638_v38 = vpop.f32.mrf.mxu1 }
 0x894   : > { %v1644_v39 = vmul.f32 0.35355338, %v1638_v38 }
 0x896   : > { %v1646_v40 = vsel %vm1035_vm11, %v1644_v39, -inf }
 0x897   : > { %1647 = vmax.xlane.f32.xlu1 %v1646_v40 }
 0x89b   : > { %v1641_v41 = vpop.f32.mrf.mxu1 }
 0x89c   : > { %v1645_v42 = vmul.f32 0.35355338, %v1641_v41 }
 0x89e   : > { %v1649_v43 = vsel %vm1035_vm11, %v1645_v42, -inf }
 0x89f   : > { %1650 = vmax.xlane.f32.xlu2 %v1649_v43 }
 0x90a   : > { %v1648_v44 = vpop.xlane.xlu1 %1647 }
 0x90b   : > { %v1652_v45 = vsub.f32 %v1644_v39, %v1648_v44 }
 0x90d   : > { %v1654_v46 = vmul.f32 1.442695, %v1652_v45 }
 0x90f   : > { %2488 = vpow2.f32 %v1654_v46  ;;  %v2455_v46 = vld [vmem:[%s3187_s3] ss:$0 sm:$0xff] }
 0x912   : > { %v1651_v47 = vpop.xlane.xlu2 %1650 }
 0x913   : > { %v1653_v48 = vsub.f32 %v1645_v42, %v1651_v47  ;;  %v2454_v42 = vld [vmem:[%s3186_s25] ss:$0 sm:$0xff] }
 0x915   : > { %v2489_v49 = vpop.eup %2488  ;;  %v1656_v50 = vmul.f32 1.442695, %v1653_v48 }
 0x916   : > { %v1658_v51 = vsel %vm1035_vm11, %v2489_v49, 0.0 }
 0x917   : > { %2490 = vpow2.f32 %v1656_v50  ;;  %1659 = vadd.xlane.f32.xlu0 %v1658_v51 }
 0x91d   : > { %v2491_v52 = vpop.eup %2490 }
 0x91e   : > { %v1661_v53 = vsel %vm1035_vm11, %v2491_v52, 0.0 }
 0x91f   : > { %1662 = vadd.xlane.f32.xlu1 %v1661_v53 }
 0x98a   : > { %v1660_v55 = vpop.xlane.xlu0 %1659 }
 0x98b   : > { %2492 = vrcp.f32 %v1660_v55 }
 0x991   : > { %v2493_v56 = vpop.eup %2492 }
 0x992   : > { %v1666_v57 = vmul.f32 %v2493_v56, %v2489_v49  ;;  %v1663_v58 = vpop.xlane.xlu1 %1662  ;;  %v1837_v56 = vld [vmem:[%s2739_s7 + $0x20] sm:$0xff] }
 0x993   : > { %2494 = vrcp.f32 %v1663_v58  ;;  %1863 = vmatpush.msra.mxu1 %v1837_v56  ;;  %v1835_v58 = vld [vmem:[%s2739_s7 + $0x10] sm:$0xff] }
 0x994   : > { %2373 = vmatmul.msk.f32.vlgmr.msra.gmra.mxu2 %vm1035_vm11, %v1666_v57  ;;  %v1836_v57 = vld [vmem:[%s2739_s7 + $0x18] sm:$0xff] }
 0x995   : > { %1864 = vmatpush.msra.mxu1 %v1836_v57 }
 0x997   : > { %1865 = vmatpush.msra.mxu1 %v1835_v58 }
 0x999   : > { %v2495_v59 = vpop.eup %2494 }
 0x99a   : > { %v1667_v60 = vmul.f32 %v2495_v59, %v2491_v52  ;;  %v1834_v59 = vld [vmem:[%s2739_s7 + $0x8] sm:$0xff] }
 0x99b   : > { %1866 = vmatpush.msra.mxu1 %v1834_v59 }
 0x99c   : > { %2374 = vmatmul.msk.f32.gmra.mxu2 %vm1035_vm11, %v1667_v60  ;;  %v1833_v60 = vld [vmem:[%s2739_s7] sm:$0xff]  ;;  %s3189_s7 = sld [smem:[#allocation3_spill]] }
 0x99d   : > { %1867 = vmatpush.msra.mxu1 %v1833_v60 }
 0x9a2   : > { %p2382_p8 = scmp.ne.s32.totalorder %s3189_s7, 1 }
 0x9a3   : > { %s3190_s16 = sld [smem:[#allocation18_spill]] (!%p2382_p8) }
 0x9a4   : > { %s3192_s7 = sld [smem:[#allocation17_spill]] (!%p2382_p8) }
 0x9a5   : > { %s3193_s17 = sld [smem:[#allocation19_spill]] (!%p2382_p8) }
 0xa17   : > { %v1691_v61 = vpop.f32.mrf.mxu2 }
 0xa18   : > { %2376 = vmatmul.msk.f32.vlgmr.msra.gmra.mxu3 %vm997_vm10, %v1691_v61  ;;  %v2456_v61 = vld [vmem:[%s3188_s28] ss:$0 sm:$0xff]  ;;  %s3191_s28 = sld [smem:[#allocation16_spill]] (!%p2382_p8) }
 0xa1f   : > { %v1694_v62 = vpop.f32.mrf.mxu2 }
 0xa20   : > { %2377 = vmatmul.msk.f32.gmra.mxu3 %vm997_vm10, %v1694_v62 }
 0xa9b   : > { %v1722_v63 = vpop.f32.mrf.mxu3 }
 0xa9c   : > { %v1728_v0 = vadd.f32 %v1722_v63, %v1523_v35 }
 0xa9e   : > { %v1730_v2 = vadd.f32 %v1728_v0, %v2766_v15 }
 0xaa0   : > { %v2967_v3 = vadd.f32 %v2453_v1, %v1730_v2 }
 0xaa2   : > { %v1740_v4 = vsel %vm846_vm2, %v2967_v3, 0.0 }
 0xaa3   : > { %1741 = vadd.xlane.f32.xlu2 %v1740_v4  ;;  %v1725_v5 = vpop.f32.mrf.mxu3 }
 0xaa4   : > { %v1729_v6 = vadd.f32 %v1725_v5, %v1524_v37  ;;  %v2457_v5 = vld [vmem:[%s787_s6] ss:$0 sm:$0xff] }
 0xaa6   : > { %v1731_v7 = vadd.f32 %v1729_v6, %v2762_v13 }
 0xaa8   : > { %v2972_v9 = vadd.f32 %v2453_v1, %v1731_v7 }
 0xaaa   : > { %v1743_v10 = vsel %vm846_vm2, %v2972_v9, 0.0 }
 0xaab   : > { %1744 = vadd.xlane.f32.xlu0 %v1743_v10 }
 0xb16   : > { %v1742_v11 = vpop.xlane.xlu2 %1741 }
 0xb17   : > { %v1746_v15 = vmul.f32 %v1742_v11, %v2770_v23 }
 0xb19   : > { %v1748_v12 = vsub.f32 %v2967_v3, %v1746_v15 }
 0xb1b   : > { %v1750_v14 = vmul.f32 %v1748_v12, %v1748_v12 }
 0xb1d   : > { %v1752_v16 = vsel %vm846_vm2, %v1750_v14, 0.0 }
 0xb1e   : > { %1753 = vadd.xlane.f32.xlu1 %v1752_v16  ;;  %v1745_v13 = vpop.xlane.xlu0 %1744 }
 0xb1f   : > { %v1747_v17 = vmul.f32 %v1745_v13, %v2770_v23 }
 0xb21   : > { %v1749_v18 = vsub.f32 %v2972_v9, %v1747_v17 }
 0xb23   : > { %v1751_v20 = vmul.f32 %v1749_v18, %v1749_v18 }
 0xb25   : > { %v1755_v21 = vsel %vm846_vm2, %v1751_v20, 0.0 }
 0xb26   : > { %1756 = vadd.xlane.f32.xlu2 %v1755_v21 }
 0xb91   : > { %v1754_v27 = vpop.xlane.xlu1 %1753 }
 0xb92   : > { %v1758_v28 = vmul.f32 %v1754_v27, %v2770_v23 }
 0xb94   : > { %v1760_v29 = vadd.f32 1e-05, %v1758_v28 }
 0xb96   : > { %2496 = vrsqrt.f32 %v1760_v29  ;;  %vm1768_vm13 = vweird.f32 %v1760_v29 }
 0xb99   : > { %v1757_v33 = vpop.xlane.xlu2 %1756 }
 0xb9a   : > { %v1759_v34 = vmul.f32 %v1757_v33, %v2770_v23 }
 0xb9c   : > { %v2497_v19 = vpop.eup %2496  ;;  %v1761_v8 = vadd.f32 1e-05, %v1759_v34 }
 0xb9d   : > { %v1763_v35 = vmul.f32 %v2497_v19, %v1760_v29  ;;  %vm1769_vm12 = vweird.f32 %v2497_v19 }
 0xb9e   : > { %2498 = vrsqrt.f32 %v1761_v8  ;;  %vm1770_vm14 = vmor %vm1768_vm13, %vm1769_vm12  ;;  %vm1778_vm0 = vweird.f32 %v1761_v8 }
 0xb9f   : > { %v1764_v36 = vmul.f32 %v2497_v19, %v1763_v35 }
 0xba1   : > { %v1765_v37 = vmul.f32 0.5, %v1764_v36 }
 0xba3   : > { %v1766_v38 = vsub.f32 1.5, %v1765_v37 }
 0xba4   : > { %v2499_v39 = vpop.eup %2498 }
 0xba5   : > { %v1767_v40 = vmul.f32 %v2497_v19, %v1766_v38  ;;  %v1773_v41 = vmul.f32 %v2499_v39, %v1761_v8  ;;  %vm1779_vm15 = vweird.f32 %v2499_v39 }
 0xba6   : > { %vm1780_vm1 = vmor %vm1778_vm0, %vm1779_vm15 }
 0xba7   : > { %v1771_v43 = vsel %vm1770_vm14, %v2497_v19, %v1767_v40  ;;  %v1774_v44 = vmul.f32 %v2499_v39, %v1773_v41 }
 0xba8   : > { %v1782_v45 = vmul.f32 %v1771_v43, %v1748_v12 }
 0xba9   : > { %v1775_v47 = vmul.f32 0.5, %v1774_v44 }
 0xbaa   : > { %v1787_v48 = vmul.f32 %v2454_v42, %v1782_v45 }
 0xbab   : > { %v1776_v49 = vsub.f32 1.5, %v1775_v47 }
 0xbac   : > { %v1792_v50 = vadd.f32 %v2455_v46, %v1787_v48 }
 0xbad   : > { %v1777_v51 = vmul.f32 %v2499_v39, %v1776_v49 }
 0xbae   : > { %2378 = vmatmul.msk.f32.vlgmr.msra.gmra.mxu0 %vm846_vm2, %v1792_v50 }
 0xbaf   : > { %v1781_v52 = vsel %vm1780_vm1, %v2499_v39, %v1777_v51 }
 0xbb0   : > { %v1783_v53 = vmul.f32 %v1781_v52, %v1749_v18 }
 0xbb2   : > { %v1788_v54 = vmul.f32 %v2454_v42, %v1783_v53 }
 0xbb4   : > { %v1793_v55 = vadd.f32 %v2455_v46, %v1788_v54 }
 0xbb6   : > { %2379 = vmatmul.msk.f32.gmra.mxu0 %vm846_vm2, %v1793_v55 }
 0xc2b   : > { %v1825_v62 = vpop.f32.mrf.mxu0 }
 0xc2c   : > { %v1826_v63 = vadd.f32 %v2456_v61, %v1825_v62 }
 0xc2e   : > { %2500 = vtanh.f32 %v1826_v63 }
 0xc33   : > { %v1828_v0 = vpop.f32.mrf.mxu0 }
 0xc34   : > { %v2501_v1 = vpop.eup %2500  ;;  %v1829_v2 = vadd.f32 %v2456_v61, %v1828_v0 }
 0xc35   : > { %2380 = vmatmul.msk.f32.vlgmr.msra.gmra.mxu1 %vm1845_vm3, %v2501_v1 }
 0xc36   : > { %2502 = vtanh.f32 %v1829_v2 }
 0xc3c   : > { %v2503_v4 = vpop.eup %2502 }
 0xc3d   : > { %2381 = vmatmul.msk.f32.gmra.mxu1 %vm1845_vm3, %v2503_v4 }
 0xcb2   : > { %v1869_v6 = vpop.f32.mrf.mxu1 }
 0xcb3   : > { %v1870_v7 = vadd.f32 %v2457_v5, %v1869_v6 }
 0xcb5   : > { %v1875_v10 = vadd.f32 %v1870_v7, %v2967_v3 }
 0xcb7   : > { %1877 = vst.msk [vmem:[#allocation2] sm:$0xff] %vm846_vm2, %v1875_v10 }
 0xcba   : > { %v1872_v11 = vpop.f32.mrf.mxu1 }
 0xcbb   : > { %v1873_v15 = vadd.f32 %v2457_v5, %v1872_v11  ;;  %1882 = sbr.rel (%p2382_p8) target bundleno = 3679 (0xe5f), region = 104 }
 0xcbd   : > { %v1876_v12 = vadd.f32 %v1873_v15, %v2972_v9 }
 0xcbf   : > { %1878 = vst.msk [vmem:[#allocation2 + $0x8] sm:$0xff] %vm846_vm2, %v1876_v12 }
 0xcc0   : > { %v1885_v14 = vsel %vm846_vm2, %v1875_v10, 0.0  ;;  %v1888_v16 = vsel %vm846_vm2, %v1876_v12, 0.0  ;;  %v1951_v26 = vld [vmem:[%s3190_s16 + $0x60] sm:$0xff]  ;;  %v1952_v27 = vld [vmem:[%s3190_s16 + $0x68] sm:$0xff]  ;;  %v1953_v28 = vld [vmem:[%s3190_s16 + $0x70] sm:$0xff] }
 0xcc1   : > { %1886 = vadd.xlane.f32.xlu0 %v1885_v14  ;;  %1983 = vmatpush.msra.mxu0 %v1951_v26  ;;  %v1954_v29 = vld [vmem:[%s3190_s16 + $0x78] sm:$0xff]  ;;  %v1947_v30 = vld [vmem:[%s3190_s16 + $0x40] sm:$0xff]  ;;  %v1948_v31 = vld [vmem:[%s3190_s16 + $0x48] sm:$0xff] }
 0xcc2   : > { %2006 = vmatpush.msra.mxu1 %v1952_v27  ;;  %2029 = vmatpush.msra.mxu2 %v1953_v28  ;;  %v1949_v32 = vld [vmem:[%s3190_s16 + $0x50] sm:$0xff]  ;;  %v1950_v33 = vld [vmem:[%s3190_s16 + $0x58] sm:$0xff]  ;;  %v1943_v34 = vld [vmem:[%s3190_s16 + $0x20] sm:$0xff] }
 0xcc3   : > { %2052 = vmatpush.msra.mxu3 %v1954_v29  ;;  %1984 = vmatpush.msra.mxu0 %v1947_v30  ;;  %v1944_v19 = vld [vmem:[%s3190_s16 + $0x28] sm:$0xff]  ;;  %v1945_v8 = vld [vmem:[%s3190_s16 + $0x30] sm:$0xff]  ;;  %v1946_v35 = vld [vmem:[%s3190_s16 + $0x38] sm:$0xff] }
 0xcc4   : > { %2007 = vmatpush.msra.mxu1 %v1948_v31  ;;  %2030 = vmatpush.msra.mxu2 %v1949_v32  ;;  %v1939_v36 = vld [vmem:[%s3190_s16] sm:$0xff]  ;;  %v1940_v37 = vld [vmem:[%s3190_s16 + $0x8] sm:$0xff]  ;;  %v1941_v38 = vld [vmem:[%s3190_s16 + $0x10] sm:$0xff] }
 0xcc5   : > { %2053 = vmatpush.msra.mxu3 %v1950_v33  ;;  %1985 = vmatpush.msra.mxu0 %v1943_v34  ;;  %v1942_v39 = vld [vmem:[%s3190_s16 + $0x18] sm:$0xff]  ;;  %v2504_v54 = vld [vmem:[%s3191_s28] ss:$0 sm:$0xff] }
 0xcc6   : > { %2008 = vmatpush.msra.mxu1 %v1944_v19  ;;  %2031 = vmatpush.msra.mxu2 %v1945_v8  ;;  %v2505_v57 = vld [vmem:[%s3192_s7] ss:$0 sm:$0xff] }
 0xcc7   : > { %2054 = vmatpush.msra.mxu3 %v1946_v35  ;;  %1986 = vmatpush.msra.mxu0 %v1939_v36  ;;  %v1955_v4 = vld [vmem:[%s3193_s17] sm:$0xf] }
 0xcc8   : > { %2009 = vmatpush.msra.mxu1 %v1940_v37  ;;  %2032 = vmatpush.msra.mxu2 %v1941_v38  ;;  %v1957_v5 = vperm.slane %v1955_v4, 0  ;;  %v1958_v6 = vperm.slane %v1955_v4, 1 }
 0xcc9   : > { %1889 = vadd.xlane.f32.xlu0 %v1888_v16  ;;  %2055 = vmatpush.msra.mxu3 %v1942_v39  ;;  %v1959_v16 = vperm.slane %v1955_v4, 2 }
 0xd34   : > { %v1887_v13 = vpop.xlane.xlu0 %1886 }
 0xd35   : > { %v1891_v3 = vmul.f32 %v1887_v13, %v2770_v23  ;;  %v1960_v13 = vperm.slane %v1955_v4, 3 }
 0xd37   : > { %v3026_v17 = vsub.f32 %v1875_v10, %v1891_v3 }
 0xd39   : > { %v1895_v18 = vmul.f32 %v3026_v17, %v3026_v17 }
 0xd3b   : > { %v1897_v9 = vsel %vm846_vm2, %v1895_v18, 0.0 }
 0xd3c   : > { %1898 = vadd.xlane.f32.xlu1 %v1897_v9  ;;  %v1890_v20 = vpop.xlane.xlu0 %1889 }
 0xd3d   : > { %v1892_v21 = vmul.f32 %v1890_v20, %v2770_v23 }
 0xd3f   : > { %v3032_v22 = vsub.f32 %v1876_v12, %v1892_v21 }
 0xd41   : > { %v1896_v24 = vmul.f32 %v3032_v22, %v3032_v22 }
 0xd43   : > { %v1900_v25 = vsel %vm846_vm2, %v1896_v24, 0.0 }
 0xd44   : > { %1901 = vadd.xlane.f32.xlu1 %v1900_v25 }
 0xdaf   : > { %v1899_v40 = vpop.xlane.xlu1 %1898 }
 0xdb0   : > { %v1903_v41 = vmul.f32 %v1899_v40, %v2770_v23 }
 0xdb2   : > { %v1905_v42 = vadd.f32 1e-05, %v1903_v41 }
 0xdb4   : > { %2506 = vrsqrt.f32 %v1905_v42  ;;  %vm1913_vm5 = vweird.f32 %v1905_v42 }
 0xdb7   : > { %v1902_v43 = vpop.xlane.xlu1 %1901 }
 0xdb8   : > { %v1904_v44 = vmul.f32 %v1902_v43, %v2770_v23 }
 0xdba   : > { %v2507_v45 = vpop.eup %2506  ;;  %v1906_v46 = vadd.f32 1e-05, %v1904_v44 }
 0xdbb   : > { %v1908_v47 = vmul.f32 %v2507_v45, %v1905_v42  ;;  %vm1914_vm4 = vweird.f32 %v2507_v45 }
 0xdbc   : > { %2508 = vrsqrt.f32 %v1906_v46  ;;  %vm1915_vm6 = vmor %vm1913_vm5, %vm1914_vm4  ;;  %vm1923_vm8 = vweird.f32 %v1906_v46 }
 0xdbd   : > { %v1909_v48 = vmul.f32 %v2507_v45, %v1908_v47 }
 0xdbf   : > { %v1910_v49 = vmul.f32 0.5, %v1909_v48 }
 0xdc1   : > { %v1911_v50 = vsub.f32 1.5, %v1910_v49 }
 0xdc2   : > { %v2509_v51 = vpop.eup %2508 }
 0xdc3   : > { %v1912_v52 = vmul.f32 %v2507_v45, %v1911_v50  ;;  %v1918_v53 = vmul.f32 %v2509_v51, %v1906_v46  ;;  %vm1924_vm7 = vweird.f32 %v2509_v51 }
 0xdc4   : > { %vm1925_vm9 = vmor %vm1923_vm8, %vm1924_vm7 }
 0xdc5   : > { %v1916_v55 = vsel %vm1915_vm6, %v2507_v45, %v1912_v52  ;;  %v1919_v56 = vmul.f32 %v2509_v51, %v1918_v53 }
 0xdc6   : > { %v1927_v23 = vmul.f32 %v1916_v55, %v3026_v17 }
 0xdc7   : > { %v1920_v58 = vmul.f32 0.5, %v1919_v56 }
 0xdc8   : > { %v1932_v59 = vmul.f32 %v2504_v54, %v1927_v23 }
 0xdc9   : > { %v1921_v60 = vsub.f32 1.5, %v1920_v58 }
 0xdca   : > { %v1937_v61 = vadd.f32 %v2505_v57, %v1932_v59 }
 0xdcb   : > { %v1922_v62 = vmul.f32 %v2509_v51, %v1921_v60 }
 0xdcc   : > { %2383 = vmatmul.msk.f32.vlgmr.msra.gmra.mxu0 %vm846_vm2, %v1937_v61  ;;  %2385 = vmatmul.msk.f32.vlgmr.msra.gmra.mxu1 %vm846_vm2, %v1937_v61 }
 0xdcd   : > { %v1926_v63 = vsel %vm1925_vm9, %v2509_v51, %v1922_v62  ;;  %2387 = vmatmul.msk.f32.vlgmr.msra.gmra.mxu2 %vm846_vm2, %v1937_v61  ;;  %2389 = vmatmul.msk.f32.vlgmr.msra.gmra.mxu3 %vm846_vm2, %v1937_v61 }
 0xdce   : > { %v1928_v0 = vmul.f32 %v1926_v63, %v3032_v22 }
 0xdd0   : > { %v1933_v1 = vmul.f32 %v2504_v54, %v1928_v0 }
 0xdd2   : > { %v1938_v2 = vadd.f32 %v2505_v57, %v1933_v1 }
 0xdd4   : > { %2384 = vmatmul.msk.f32.gmra.mxu0 %vm846_vm2, %v1938_v2  ;;  %2386 = vmatmul.msk.f32.gmra.mxu1 %vm846_vm2, %v1938_v2 }
 0xdd5   : > { %2388 = vmatmul.msk.f32.gmra.mxu2 %vm846_vm2, %v1938_v2  ;;  %2390 = vmatmul.msk.f32.gmra.mxu3 %vm846_vm2, %v1938_v2 }
 0xe49   : > { %v1988_v7 = vpop.f32.mrf.mxu0  ;;  %v2011_v10 = vpop.f32.mrf.mxu1 }
 0xe4a   : > { %v1989_v11 = vadd.f32 %v1988_v7, %v1957_v5  ;;  %v2012_v15 = vadd.f32 %v2011_v10, %v1958_v6 }
 0xe4c   : > { %v2063_v12 = vmax.f32 %v1989_v11, 0.0  ;;  %v2064_v14 = vmax.f32 %v2012_v15, 0.0 }
 0xe4e   : > { %2071 = vst [vmem:[%s2744_s15] sm:$0xff] %v2063_v12 }
 0xe4f   : > { %2072 = vst [vmem:[%s2744_s15 + $0x8] sm:$0xff] %v2064_v14 }
 0xe50   : > { %v2034_v3 = vpop.f32.mrf.mxu2  ;;  %v2057_v17 = vpop.f32.mrf.mxu3 }
 0xe51   : > { %v2035_v18 = vadd.f32 %v2034_v3, %v1959_v16  ;;  %v2058_v9 = vadd.f32 %v2057_v17, %v1960_v13  ;;  %v1991_v20 = vpop.f32.mrf.mxu0  ;;  %v2014_v21 = vpop.f32.mrf.mxu1 }
 0xe52   : > { %v1992_v22 = vadd.f32 %v1991_v20, %v1957_v5  ;;  %v2015_v24 = vadd.f32 %v2014_v21, %v1958_v6 }
 0xe53   : > { %v2065_v25 = vmax.f32 %v2035_v18, 0.0  ;;  %v2066_v26 = vmax.f32 %v2058_v9, 0.0 }
 0xe54   : > { %v2067_v27 = vmax.f32 %v1992_v22, 0.0  ;;  %v2068_v28 = vmax.f32 %v2015_v24, 0.0 }
 0xe55   : > { %2073 = vst [vmem:[%s2744_s15 + $0x10] sm:$0xff] %v2065_v25 }
 0xe56   : > { %2074 = vst [vmem:[%s2744_s15 + $0x18] sm:$0xff] %v2066_v26 }
 0xe57   : > { %2075 = vst [vmem:[%s2744_s15 + $0x20] sm:$0xff] %v2067_v27 }
 0xe58   : > { %2076 = vst [vmem:[%s2744_s15 + $0x28] sm:$0xff] %v2068_v28  ;;  %v2037_v29 = vpop.f32.mrf.mxu2  ;;  %v2060_v30 = vpop.f32.mrf.mxu3 }
 0xe59   : > { %v2038_v31 = vadd.f32 %v2037_v29, %v1959_v16  ;;  %v2061_v32 = vadd.f32 %v2060_v30, %v1960_v13 }
 0xe5b   : > { %v2069_v33 = vmax.f32 %v2038_v31, 0.0  ;;  %v2070_v34 = vmax.f32 %v2061_v32, 0.0 }
 0xe5d   : > { %2077 = vst [vmem:[%s2744_s15 + $0x30] sm:$0xff] %v2069_v33 }
 0xe5e   : > { %2078 = vst [vmem:[%s2744_s15 + $0x38] sm:$0xff] %v2070_v34 }
 0xe5f PF: > { %s3194_s18 = sld [smem:[#allocation6_spill]] }
 0xe60   : > { %s3195_s0 = sld [smem:[#allocation4_spill]] }
 0xe61   : > { %s3196_s30 = sld [smem:[#allocation5_spill]] }
 0xe62   : > { %s3197_s20 = sld [smem:[#allocation7_spill]] }
 0xe63   : > { %s3198_s21 = sld [smem:[#allocation8_spill]] }
 0xe65   : > { %s29_s1 = sadd.s32 1, %s3194_s18  }
 0xe66   : > { %p26_p9 = scmp.ge.s32.totalorder %s29_s1, 6  }
 0xe68   :  { %28 = sbr.rel (!%p26_p9) target bundleno = 13 (0xd), region = 181 }

</bundles_post_ra>
